<compile_context>
chip_gen: v6e
topology: v6e:2x2x1
jax: 0.10.0
libtpu: 0.0.40
codegen_flags: <defaults>
</compile_context>

<pallas_src>
import jax
import jax.numpy as jnp
from jax.experimental import pallas as pl
from jax.experimental.pallas import tpu as pltpu

# ---------------------------------------------------------------------------
# Small but structurally-faithful hyperparameters (the reference uses
# n_embed=384, n_head=6, n_layer=6, block_size=256, vocab=len(set(text))).
# ---------------------------------------------------------------------------
VOCAB_SIZE = 96
VOCAB_PAD = 128          # lane-dense padded vocab for the lm_head store path
N_EMBED = 128
BLOCK_SIZE = 32
N_HEAD = 2
N_LAYER = 2
HEAD_SIZE = N_EMBED      # NOTE: the reference Block sets head_size = n_embed (its quirk)

_VMEM_LIMIT = 32 * 1024 * 1024   # explicit, safe on v5e/v6e/v7x


# ---------------------------------------------------------------------------
# Fused transformer-block kernel: one grid point per batch element.
# ---------------------------------------------------------------------------
def _ln_f32(x, g, b):
    # torch LayerNorm: biased variance, eps=1e-5.  x:(T,C) f32, g/b:(1,C) f32
    mean = jnp.mean(x, axis=-1, keepdims=True)
    xc = x - mean
    var = jnp.mean(xc * xc, axis=-1, keepdims=True)
    return xc * jax.lax.rsqrt(var + 1e-5) * g + b


def _block_kernel(x_ref, ln1g_ref, ln1b_ref, wqkv_ref, wp_ref, bp_ref,
                  ln2g_ref, ln2b_ref, w1_ref, b1_ref, w2_ref, b2_ref,
                  lng_ref, lnb_ref, o_ref):
    bf16 = jnp.bfloat16
    x = x_ref[0]                                                   # (T, C) f32
    T, C = x.shape

    # ---- x + sa(ln1(x)) ----
    ln1 = _ln_f32(x, ln1g_ref[...], ln1b_ref[...])
    # fused q/k/v projection, one wide matmul: (T, C) @ (C, 3*H*HS)
    qkv = jnp.dot(ln1.astype(bf16), wqkv_ref[...],
                  preferred_element_type=jnp.float32)              # (T, 3*H*HS) f32

    row = jax.lax.broadcasted_iota(jnp.int32, (T, T), 0)
    col = jax.lax.broadcasted_iota(jnp.int32, (T, T), 1)
    causal = col <= row
    scale = N_EMBED ** -0.5          # reference scales by x.shape[-1] ** -0.5

    wp = wp_ref[...]                                               # (H*HS, C) bf16
    sa = jnp.zeros_like(x)                                         # (T, C) f32
    for h in range(N_HEAD):
        q = qkv[:, h * HEAD_SIZE:(h + 1) * HEAD_SIZE]
        k = qkv[:, (N_HEAD + h) * HEAD_SIZE:(N_HEAD + h + 1) * HEAD_SIZE]
        v = qkv[:, (2 * N_HEAD + h) * HEAD_SIZE:(2 * N_HEAD + h + 1) * HEAD_SIZE]
        # wei = q @ k^T * C**-0.5  (contraction on head dim, no explicit transpose)
        wei = jax.lax.dot_general(q.astype(bf16), k.astype(bf16),
                                  (((1,), (1,)), ((), ())),
                                  preferred_element_type=jnp.float32) * scale
        wei = jnp.where(causal, wei, -1e30)                        # causal mask (tril)
        wei = wei - jnp.max(wei, axis=-1, keepdims=True)
        p = jnp.exp(wei)
        p = p * pl.reciprocal(jnp.sum(p, axis=-1, keepdims=True), approx=True)
        # (attention dropout: eval-mode identity)
        out_h = jnp.dot(p.astype(bf16), v.astype(bf16),
                        preferred_element_type=jnp.float32)        # (T, HS) f32
        # fold the output projection of this head directly into the accumulator:
        # cat(heads) @ Wp  ==  sum_h  head_h @ Wp[h*HS:(h+1)*HS, :]
        sa = sa + jnp.dot(out_h.astype(bf16),
                          wp[h * HEAD_SIZE:(h + 1) * HEAD_SIZE, :],
                          preferred_element_type=jnp.float32)
    x1 = x + sa + bp_ref[...]        # proj bias + residual (proj dropout: identity)

    # ---- x + ffwd(ln2(x)) : Linear -> ReLU -> Linear -> LayerNorm -> Dropout ----
    ln2 = _ln_f32(x1, ln2g_ref[...], ln2b_ref[...])
    h1 = jnp.dot(ln2.astype(bf16), w1_ref[...],
                 preferred_element_type=jnp.float32) + b1_ref[...]
    h1 = jnp.maximum(h1, 0.0)
    h2 = jnp.dot(h1.astype(bf16), w2_ref[...],
                 preferred_element_type=jnp.float32) + b2_ref[...]
    h3 = _ln_f32(h2, lng_ref[...], lnb_ref[...])
    o_ref[0] = (x1 + h3).astype(o_ref.dtype)   # ffwd dropout: eval-mode identity


def transformer_block(x, blk):
    B, T, C = x.shape
    HH = N_HEAD * HEAD_SIZE
    H4 = 4 * C

    def w(shape):
        return pl.BlockSpec(shape, lambda b: (0,) * len(shape))

    return pl.pallas_call(
        _block_kernel,
        out_shape=jax.ShapeDtypeStruct((B, T, C), x.dtype),
        grid=(B,),
        in_specs=[
            pl.BlockSpec((1, T, C), lambda b: (b, 0, 0)),   # x
            w((1, C)), w((1, C)),                           # ln1 gamma/beta
            w((C, 3 * HH)),                                 # fused Wq|Wk|Wv
            w((HH, C)), w((1, C)),                          # proj W, b
            w((1, C)), w((1, C)),                           # ln2 gamma/beta
            w((C, H4)), w((1, H4)),                         # ffn W1, b1
            w((H4, C)), w((1, C)),                          # ffn W2, b2
            w((1, C)), w((1, C)),                           # ffn LayerNorm gamma/beta
        ],
        out_specs=pl.BlockSpec((1, T, C), lambda b: (b, 0, 0)),
        compiler_params=pltpu.CompilerParams(
            dimension_semantics=("parallel",),
            vmem_limit_bytes=_VMEM_LIMIT),
    )(x,
      blk["ln1_g"], blk["ln1_b"],
      blk["wqkv"],
      blk["proj_w"], blk["proj_b"],
      blk["ln2_g"], blk["ln2_b"],
      blk["ff_w1"], blk["ff_b1"],
      blk["ff_w2"], blk["ff_b2"],
      blk["ff_ln_g"], blk["ff_ln_b"])


# ---------------------------------------------------------------------------
# M-tiled linear (lm_head): bf16 matmul, lane-dense padded N, parallel M grid.
# ---------------------------------------------------------------------------
def _linear_kernel(x_ref, w_ref, b_ref, o_ref):
    acc = jnp.dot(x_ref[...].astype(jnp.bfloat16), w_ref[...],
                  preferred_element_type=jnp.float32)
    o_ref[...] = (acc + b_ref[...]).astype(o_ref.dtype)


def linear_tiled(x, w, b, tile_m=256):
    M, K = x.shape
    N = w.shape[1]
    tm = min(tile_m, M)
    Mp = pl.cdiv(M, tm) * tm
    if Mp != M:
        x = jnp.pad(x, ((0, Mp - M), (0, 0)))
    out = pl.pallas_call(
        _linear_kernel,
        out_shape=jax.ShapeDtypeStruct((Mp, N), jnp.float32),
        grid=(Mp // tm,),
        in_specs=[
            pl.BlockSpec((tm, K), lambda i: (i, 0)),
            pl.BlockSpec((K, N), lambda i: (0, 0)),
            pl.BlockSpec((1, N), lambda i: (0, 0)),
        ],
        out_specs=pl.BlockSpec((tm, N), lambda i: (i, 0)),
        compiler_params=pltpu.CompilerParams(
            dimension_semantics=("parallel",),
            vmem_limit_bytes=_VMEM_LIMIT),
    )(x, w, b.reshape(1, N))
    return out[:M]


# ---------------------------------------------------------------------------
# Model (parameters + forward)
# ---------------------------------------------------------------------------
def init_params(key):
    def nrm(k, shape, scale=0.02, dtype=jnp.bfloat16):
        return (scale * jax.random.normal(k, shape)).astype(dtype)

    keys = jax.random.split(key, 3 + N_LAYER)
    # lm_head padded to 128 output lanes; pad columns are zero and sliced off later.
    lm_w = nrm(keys[2], (N_EMBED, VOCAB_SIZE), dtype=jnp.float32)
    lm_w = jnp.pad(lm_w, ((0, 0), (0, VOCAB_PAD - VOCAB_SIZE))).astype(jnp.bfloat16)
    params = {
        "tok_emb": nrm(keys[0], (VOCAB_SIZE, N_EMBED), dtype=jnp.float32),
        "pos_emb": nrm(keys[1], (BLOCK_SIZE, N_EMBED), dtype=jnp.float32),
        "lm_w": lm_w,
        "lm_b": jnp.zeros((VOCAB_PAD,), jnp.float32),
        "blocks": [],
    }
    HH = N_HEAD * HEAD_SIZE
    for l in range(N_LAYER):
        bk = jax.random.split(keys[3 + l], 6)
        wq = nrm(bk[0], (N_EMBED, HH))          # column block h*HS:(h+1)*HS = head h
        wk = nrm(bk[1], (N_EMBED, HH))
        wv = nrm(bk[2], (N_EMBED, HH))
        params["blocks"].append({
            "wqkv": jnp.concatenate([wq, wk, wv], axis=1),        # (C, 3*H*HS) bf16
            "proj_w": nrm(bk[3], (HH, N_EMBED)),                  # bf16
            "proj_b": jnp.zeros((1, N_EMBED), jnp.float32),
            "ln1_g": jnp.ones((1, N_EMBED), jnp.float32),
            "ln1_b": jnp.zeros((1, N_EMBED), jnp.float32),
            "ln2_g": jnp.ones((1, N_EMBED), jnp.float32),
            "ln2_b": jnp.zeros((1, N_EMBED), jnp.float32),
            "ff_w1": nrm(bk[4], (N_EMBED, 4 * N_EMBED)),          # bf16
            "ff_b1": jnp.zeros((1, 4 * N_EMBED), jnp.float32),
            "ff_w2": nrm(bk[5], (4 * N_EMBED, N_EMBED)),          # bf16
            "ff_b2": jnp.zeros((1, N_EMBED), jnp.float32),
            "ff_ln_g": jnp.ones((1, N_EMBED), jnp.float32),
            "ff_ln_b": jnp.zeros((1, N_EMBED), jnp.float32),
        })
    return params


def forward(params, idx, targets=None):
    B, T = idx.shape
    tok_emb = jnp.take(params["tok_emb"], idx, axis=0)        # (B, T, C) gather (glue)
    pos_emb = params["pos_emb"][:T]                           # (T, C)
    x = tok_emb + pos_emb[None, :, :]
    for blk in params["blocks"]:
        x = transformer_block(x, blk)                         # fused Pallas block
    logits_pad = linear_tiled(x.reshape(B * T, N_EMBED),
                              params["lm_w"], params["lm_b"])  # (B*T, 128)
    logits = logits_pad[:, :VOCAB_SIZE].reshape(B, T, VOCAB_SIZE)
    if targets is None:
        return logits, None
    # cross-entropy (glue, plain JAX — matches F.cross_entropy on flattened logits)
    lf = logits.reshape(B * T, VOCAB_SIZE)
    tf = targets.reshape(B * T)
    logp = jax.nn.log_softmax(lf, axis=-1)
    loss = -jnp.mean(jnp.take_along_axis(logp, tf[:, None], axis=1))
    return logits, loss

# TODO(synk): "longer term" whole-forward single pallas_call with scalar-prefetched
# token ids + in-kernel embedding gather is possible (params < 3 MiB) but omitted.


# ---------------------------------------------------------------------------
if __name__ == "__main__":
    key = jax.random.PRNGKey(0)
    pkey, dkey, tkey = jax.random.split(key, 3)
    params = init_params(pkey)

    B, T = 2, 32                                  # T <= BLOCK_SIZE
    idx = jax.random.randint(dkey, (B, T), 0, VOCAB_SIZE, dtype=jnp.int32)
    targets = jax.random.randint(tkey, (B, T), 0, VOCAB_SIZE, dtype=jnp.int32)

    logits_only, no_loss = forward(params, idx)               # targets=None path
    logits, loss = forward(params, idx, targets)              # loss path
    jax.block_until_ready((logits_only, logits, loss))

    assert logits.shape == (B, T, VOCAB_SIZE)
    assert no_loss is None
    assert bool(jnp.isfinite(loss))
    print("KERNEL_OK")
</pallas_src>

<mosaic_0001>
module attributes {stable_mosaic.version = 11 : i64} {
  func.func @_block_kernel(%arg0: i32, %arg1: memref<1x32x128xf32, #tpu.memory_space<vmem>>, %arg2: memref<1x128xf32, #tpu.memory_space<vmem>>, %arg3: memref<1x128xf32, #tpu.memory_space<vmem>>, %arg4: memref<128x768xbf16, #tpu.memory_space<vmem>>, %arg5: memref<256x128xbf16, #tpu.memory_space<vmem>>, %arg6: memref<1x128xf32, #tpu.memory_space<vmem>>, %arg7: memref<1x128xf32, #tpu.memory_space<vmem>>, %arg8: memref<1x128xf32, #tpu.memory_space<vmem>>, %arg9: memref<128x512xbf16, #tpu.memory_space<vmem>>, %arg10: memref<1x512xf32, #tpu.memory_space<vmem>>, %arg11: memref<512x128xbf16, #tpu.memory_space<vmem>>, %arg12: memref<1x128xf32, #tpu.memory_space<vmem>>, %arg13: memref<1x128xf32, #tpu.memory_space<vmem>>, %arg14: memref<1x128xf32, #tpu.memory_space<vmem>>, %arg15: memref<1x32x128xf32, #tpu.memory_space<vmem>>) attributes {dimension_semantics = [#tpu.dimension_semantics<parallel>], iteration_bounds = array<i64: 2>, scalar_prefetch = 0 : i64, scratch_operands = 0 : i64, tpu.core_type = #tpu.core_type<tc>, window_params = [{transform_indices = @transform_0, window_bounds = array<i64: 1, 32, 128>}, {pipeline_mode = #tpu.pipeline_mode<synchronous>, transform_indices = @transform_1, window_bounds = array<i64: 1, 128>}, {pipeline_mode = #tpu.pipeline_mode<synchronous>, transform_indices = @transform_2, window_bounds = array<i64: 1, 128>}, {pipeline_mode = #tpu.pipeline_mode<synchronous>, transform_indices = @transform_3, window_bounds = array<i64: 128, 768>}, {pipeline_mode = #tpu.pipeline_mode<synchronous>, transform_indices = @transform_4, window_bounds = array<i64: 256, 128>}, {pipeline_mode = #tpu.pipeline_mode<synchronous>, transform_indices = @transform_5, window_bounds = array<i64: 1, 128>}, {pipeline_mode = #tpu.pipeline_mode<synchronous>, transform_indices = @transform_6, window_bounds = array<i64: 1, 128>}, {pipeline_mode = #tpu.pipeline_mode<synchronous>, transform_indices = @transform_7, window_bounds = array<i64: 1, 128>}, {pipeline_mode = #tpu.pipeline_mode<synchronous>, transform_indices = @transform_8, window_bounds = array<i64: 128, 512>}, {pipeline_mode = #tpu.pipeline_mode<synchronous>, transform_indices = @transform_9, window_bounds = array<i64: 1, 512>}, {pipeline_mode = #tpu.pipeline_mode<synchronous>, transform_indices = @transform_10, window_bounds = array<i64: 512, 128>}, {pipeline_mode = #tpu.pipeline_mode<synchronous>, transform_indices = @transform_11, window_bounds = array<i64: 1, 128>}, {pipeline_mode = #tpu.pipeline_mode<synchronous>, transform_indices = @transform_12, window_bounds = array<i64: 1, 128>}, {pipeline_mode = #tpu.pipeline_mode<synchronous>, transform_indices = @transform_13, window_bounds = array<i64: 1, 128>}, {transform_indices = @transform_14, window_bounds = array<i64: 1, 32, 128>}]} {
    %c0 = arith.constant 0 : index
    %c0_0 = arith.constant 0 : index
    %c0_1 = arith.constant 0 : index
    %0 = vector.load %arg1[%c0, %c0_0, %c0_1] : memref<1x32x128xf32, #tpu.memory_space<vmem>>, vector<1x32x128xf32>
    %1 = vector.shape_cast %0 : vector<1x32x128xf32> to vector<32x128xf32>
    %c0_2 = arith.constant 0 : index
    %c0_3 = arith.constant 0 : index
    %2 = vector.load %arg2[%c0_2, %c0_3] : memref<1x128xf32, #tpu.memory_space<vmem>>, vector<1x128xf32>
    %c0_4 = arith.constant 0 : index
    %c0_5 = arith.constant 0 : index
    %3 = vector.load %arg3[%c0_4, %c0_5] : memref<1x128xf32, #tpu.memory_space<vmem>>, vector<1x128xf32>
    %cst = arith.constant dense<0.000000e+00> : vector<32xf32>
    %4 = vector.multi_reduction <add>, %1, %cst [1] : vector<32x128xf32> to vector<32xf32>
    %5 = vector.shape_cast %4 : vector<32xf32> to vector<32x1xf32>
    %cst_6 = arith.constant 1.280000e+02 : f32
    %6 = vector.broadcast %cst_6 : f32 to vector<32x1xf32>
    %7 = arith.divf %5, %6 : vector<32x1xf32>
    %8 = vector.broadcast %7 : vector<32x1xf32> to vector<32x128xf32>
    %9 = arith.subf %1, %8 : vector<32x128xf32>
    %10 = arith.mulf %9, %9 : vector<32x128xf32>
    %cst_7 = arith.constant dense<0.000000e+00> : vector<32xf32>
    %11 = vector.multi_reduction <add>, %10, %cst_7 [1] : vector<32x128xf32> to vector<32xf32>
    %12 = vector.shape_cast %11 : vector<32xf32> to vector<32x1xf32>
    %cst_8 = arith.constant 1.280000e+02 : f32
    %13 = vector.broadcast %cst_8 : f32 to vector<32x1xf32>
    %14 = arith.divf %12, %13 : vector<32x1xf32>
    %cst_9 = arith.constant 9.99999974E-6 : f32
    %15 = vector.broadcast %cst_9 : f32 to vector<32x1xf32>
    %16 = arith.addf %14, %15 : vector<32x1xf32>
    %17 = math.rsqrt %16 : vector<32x1xf32>
    %18 = vector.broadcast %17 : vector<32x1xf32> to vector<32x128xf32>
    %19 = arith.mulf %9, %18 : vector<32x128xf32>
    %20 = vector.broadcast %2 : vector<1x128xf32> to vector<32x128xf32>
    %21 = arith.mulf %19, %20 : vector<32x128xf32>
    %22 = vector.broadcast %3 : vector<1x128xf32> to vector<32x128xf32>
    %23 = arith.addf %21, %22 : vector<32x128xf32>
    %24 = arith.truncf %23 : vector<32x128xf32> to vector<32x128xbf16>
    %c0_10 = arith.constant 0 : index
    %c0_11 = arith.constant 0 : index
    %25 = vector.load %arg4[%c0_10, %c0_11] : memref<128x768xbf16, #tpu.memory_space<vmem>>, vector<128x768xbf16>
    %cst_12 = arith.constant dense<0.000000e+00> : vector<32x768xf32>
    %26 = tpu.matmul %24, %25, %cst_12 {dimension_numbers = #tpu.dot_dimension_numbers<[1], [0], [0], [1], [0, 0, 1, 1], [], []>} : vector<32x128xbf16>, vector<128x768xbf16>, vector<32x768xf32> -> vector<32x768xf32>
    %27 = tpu.iota {dimensions = array<i32: 0>} : vector<32x32xi32>
    %28 = tpu.iota {dimensions = array<i32: 1>} : vector<32x32xi32>
    %29 = arith.cmpi sle, %28, %27 : vector<32x32xi32>
    %c0_13 = arith.constant 0 : index
    %c0_14 = arith.constant 0 : index
    %30 = vector.load %arg5[%c0_13, %c0_14] : memref<256x128xbf16, #tpu.memory_space<vmem>>, vector<256x128xbf16>
    %cst_15 = arith.constant 0.000000e+00 : f32
    %31 = vector.broadcast %cst_15 : f32 to vector<32x128xf32>
    %32 = vector.extract_strided_slice %26 {offsets = [0, 0], sizes = [32, 128], strides = [1, 1]} : vector<32x768xf32> to vector<32x128xf32>
    %33 = vector.extract_strided_slice %26 {offsets = [0, 256], sizes = [32, 128], strides = [1, 1]} : vector<32x768xf32> to vector<32x128xf32>
    %34 = vector.extract_strided_slice %26 {offsets = [0, 512], sizes = [32, 128], strides = [1, 1]} : vector<32x768xf32> to vector<32x128xf32>
    %35 = arith.truncf %32 : vector<32x128xf32> to vector<32x128xbf16>
    %36 = arith.truncf %33 : vector<32x128xf32> to vector<32x128xbf16>
    %cst_16 = arith.constant dense<0.000000e+00> : vector<32x32xf32>
    %37 = tpu.matmul %35, %36, %cst_16 {dimension_numbers = #tpu.dot_dimension_numbers<[1], [1], [0], [0], [0, 0, 1, 0], [], []>} : vector<32x128xbf16>, vector<32x128xbf16>, vector<32x32xf32> -> vector<32x32xf32>
    %cst_17 = arith.constant 0.0883883461 : f32
    %38 = vector.broadcast %cst_17 : f32 to vector<32x32xf32>
    %39 = arith.mulf %37, %38 : vector<32x32xf32>
    %cst_18 = arith.constant -1.000000e+30 : f32
    %40 = vector.broadcast %cst_18 : f32 to vector<32x32xf32>
    %41 = arith.select %29, %39, %40 : vector<32x32xi1>, vector<32x32xf32>
    %cst_19 = arith.constant dense<0xFF800000> : vector<32xf32>
    %42 = vector.multi_reduction <maximumf>, %41, %cst_19 [1] : vector<32x32xf32> to vector<32xf32>
    %43 = vector.shape_cast %42 : vector<32xf32> to vector<32x1xf32>
    %44 = vector.broadcast %43 : vector<32x1xf32> to vector<32x32xf32>
    %45 = arith.subf %41, %44 : vector<32x32xf32>
    %46 = math.exp %45 : vector<32x32xf32>
    %cst_20 = arith.constant dense<0.000000e+00> : vector<32xf32>
    %47 = vector.multi_reduction <add>, %46, %cst_20 [1] : vector<32x32xf32> to vector<32xf32>
    %48 = vector.shape_cast %47 : vector<32xf32> to vector<32x1xf32>
    %49 = tpu.reciprocal %48 {approx = true} : vector<32x1xf32> -> vector<32x1xf32>
    %50 = vector.broadcast %49 : vector<32x1xf32> to vector<32x32xf32>
    %51 = arith.mulf %46, %50 : vector<32x32xf32>
    %52 = arith.truncf %51 : vector<32x32xf32> to vector<32x32xbf16>
    %53 = arith.truncf %34 : vector<32x128xf32> to vector<32x128xbf16>
    %cst_21 = arith.constant dense<0.000000e+00> : vector<32x128xf32>
    %54 = tpu.matmul %52, %53, %cst_21 {dimension_numbers = #tpu.dot_dimension_numbers<[1], [0], [0], [1], [0, 0, 1, 1], [], []>} : vector<32x32xbf16>, vector<32x128xbf16>, vector<32x128xf32> -> vector<32x128xf32>
    %55 = arith.truncf %54 : vector<32x128xf32> to vector<32x128xbf16>
    %56 = vector.extract_strided_slice %30 {offsets = [0, 0], sizes = [128, 128], strides = [1, 1]} : vector<256x128xbf16> to vector<128x128xbf16>
    %cst_22 = arith.constant dense<0.000000e+00> : vector<32x128xf32>
    %57 = tpu.matmul %55, %56, %cst_22 {dimension_numbers = #tpu.dot_dimension_numbers<[1], [0], [0], [1], [0, 0, 1, 1], [], []>} : vector<32x128xbf16>, vector<128x128xbf16>, vector<32x128xf32> -> vector<32x128xf32>
    %58 = arith.addf %31, %57 : vector<32x128xf32>
    %59 = vector.extract_strided_slice %26 {offsets = [0, 128], sizes = [32, 128], strides = [1, 1]} : vector<32x768xf32> to vector<32x128xf32>
    %60 = vector.extract_strided_slice %26 {offsets = [0, 384], sizes = [32, 128], strides = [1, 1]} : vector<32x768xf32> to vector<32x128xf32>
    %61 = vector.extract_strided_slice %26 {offsets = [0, 640], sizes = [32, 128], strides = [1, 1]} : vector<32x768xf32> to vector<32x128xf32>
    %62 = arith.truncf %59 : vector<32x128xf32> to vector<32x128xbf16>
    %63 = arith.truncf %60 : vector<32x128xf32> to vector<32x128xbf16>
    %cst_23 = arith.constant dense<0.000000e+00> : vector<32x32xf32>
    %64 = tpu.matmul %62, %63, %cst_23 {dimension_numbers = #tpu.dot_dimension_numbers<[1], [1], [0], [0], [0, 0, 1, 0], [], []>} : vector<32x128xbf16>, vector<32x128xbf16>, vector<32x32xf32> -> vector<32x32xf32>
    %cst_24 = arith.constant 0.0883883461 : f32
    %65 = vector.broadcast %cst_24 : f32 to vector<32x32xf32>
    %66 = arith.mulf %64, %65 : vector<32x32xf32>
    %cst_25 = arith.constant -1.000000e+30 : f32
    %67 = vector.broadcast %cst_25 : f32 to vector<32x32xf32>
    %68 = arith.select %29, %66, %67 : vector<32x32xi1>, vector<32x32xf32>
    %cst_26 = arith.constant dense<0xFF800000> : vector<32xf32>
    %69 = vector.multi_reduction <maximumf>, %68, %cst_26 [1] : vector<32x32xf32> to vector<32xf32>
    %70 = vector.shape_cast %69 : vector<32xf32> to vector<32x1xf32>
    %71 = vector.broadcast %70 : vector<32x1xf32> to vector<32x32xf32>
    %72 = arith.subf %68, %71 : vector<32x32xf32>
    %73 = math.exp %72 : vector<32x32xf32>
    %cst_27 = arith.constant dense<0.000000e+00> : vector<32xf32>
    %74 = vector.multi_reduction <add>, %73, %cst_27 [1] : vector<32x32xf32> to vector<32xf32>
    %75 = vector.shape_cast %74 : vector<32xf32> to vector<32x1xf32>
    %76 = tpu.reciprocal %75 {approx = true} : vector<32x1xf32> -> vector<32x1xf32>
    %77 = vector.broadcast %76 : vector<32x1xf32> to vector<32x32xf32>
    %78 = arith.mulf %73, %77 : vector<32x32xf32>
    %79 = arith.truncf %78 : vector<32x32xf32> to vector<32x32xbf16>
    %80 = arith.truncf %61 : vector<32x128xf32> to vector<32x128xbf16>
    %cst_28 = arith.constant dense<0.000000e+00> : vector<32x128xf32>
    %81 = tpu.matmul %79, %80, %cst_28 {dimension_numbers = #tpu.dot_dimension_numbers<[1], [0], [0], [1], [0, 0, 1, 1], [], []>} : vector<32x32xbf16>, vector<32x128xbf16>, vector<32x128xf32> -> vector<32x128xf32>
    %82 = arith.truncf %81 : vector<32x128xf32> to vector<32x128xbf16>
    %83 = vector.extract_strided_slice %30 {offsets = [128, 0], sizes = [128, 128], strides = [1, 1]} : vector<256x128xbf16> to vector<128x128xbf16>
    %cst_29 = arith.constant dense<0.000000e+00> : vector<32x128xf32>
    %84 = tpu.matmul %82, %83, %cst_29 {dimension_numbers = #tpu.dot_dimension_numbers<[1], [0], [0], [1], [0, 0, 1, 1], [], []>} : vector<32x128xbf16>, vector<128x128xbf16>, vector<32x128xf32> -> vector<32x128xf32>
    %85 = arith.addf %58, %84 : vector<32x128xf32>
    %86 = arith.addf %1, %85 : vector<32x128xf32>
    %c0_30 = arith.constant 0 : index
    %c0_31 = arith.constant 0 : index
    %87 = vector.load %arg6[%c0_30, %c0_31] : memref<1x128xf32, #tpu.memory_space<vmem>>, vector<1x128xf32>
    %88 = vector.broadcast %87 : vector<1x128xf32> to vector<32x128xf32>
    %89 = arith.addf %86, %88 : vector<32x128xf32>
    %c0_32 = arith.constant 0 : index
    %c0_33 = arith.constant 0 : index
    %90 = vector.load %arg7[%c0_32, %c0_33] : memref<1x128xf32, #tpu.memory_space<vmem>>, vector<1x128xf32>
    %c0_34 = arith.constant 0 : index
    %c0_35 = arith.constant 0 : index
    %91 = vector.load %arg8[%c0_34, %c0_35] : memref<1x128xf32, #tpu.memory_space<vmem>>, vector<1x128xf32>
    %cst_36 = arith.constant dense<0.000000e+00> : vector<32xf32>
    %92 = vector.multi_reduction <add>, %89, %cst_36 [1] : vector<32x128xf32> to vector<32xf32>
    %93 = vector.shape_cast %92 : vector<32xf32> to vector<32x1xf32>
    %cst_37 = arith.constant 1.280000e+02 : f32
    %94 = vector.broadcast %cst_37 : f32 to vector<32x1xf32>
    %95 = arith.divf %93, %94 : vector<32x1xf32>
    %96 = vector.broadcast %95 : vector<32x1xf32> to vector<32x128xf32>
    %97 = arith.subf %89, %96 : vector<32x128xf32>
    %98 = arith.mulf %97, %97 : vector<32x128xf32>
    %cst_38 = arith.constant dense<0.000000e+00> : vector<32xf32>
    %99 = vector.multi_reduction <add>, %98, %cst_38 [1] : vector<32x128xf32> to vector<32xf32>
    %100 = vector.shape_cast %99 : vector<32xf32> to vector<32x1xf32>
    %cst_39 = arith.constant 1.280000e+02 : f32
    %101 = vector.broadcast %cst_39 : f32 to vector<32x1xf32>
    %102 = arith.divf %100, %101 : vector<32x1xf32>
    %cst_40 = arith.constant 9.99999974E-6 : f32
    %103 = vector.broadcast %cst_40 : f32 to vector<32x1xf32>
    %104 = arith.addf %102, %103 : vector<32x1xf32>
    %105 = math.rsqrt %104 : vector<32x1xf32>
    %106 = vector.broadcast %105 : vector<32x1xf32> to vector<32x128xf32>
    %107 = arith.mulf %97, %106 : vector<32x128xf32>
    %108 = vector.broadcast %90 : vector<1x128xf32> to vector<32x128xf32>
    %109 = arith.mulf %107, %108 : vector<32x128xf32>
    %110 = vector.broadcast %91 : vector<1x128xf32> to vector<32x128xf32>
    %111 = arith.addf %109, %110 : vector<32x128xf32>
    %112 = arith.truncf %111 : vector<32x128xf32> to vector<32x128xbf16>
    %c0_41 = arith.constant 0 : index
    %c0_42 = arith.constant 0 : index
    %113 = vector.load %arg9[%c0_41, %c0_42] : memref<128x512xbf16, #tpu.memory_space<vmem>>, vector<128x512xbf16>
    %cst_43 = arith.constant dense<0.000000e+00> : vector<32x512xf32>
    %114 = tpu.matmul %112, %113, %cst_43 {dimension_numbers = #tpu.dot_dimension_numbers<[1], [0], [0], [1], [0, 0, 1, 1], [], []>} : vector<32x128xbf16>, vector<128x512xbf16>, vector<32x512xf32> -> vector<32x512xf32>
    %c0_44 = arith.constant 0 : index
    %c0_45 = arith.constant 0 : index
    %115 = vector.load %arg10[%c0_44, %c0_45] : memref<1x512xf32, #tpu.memory_space<vmem>>, vector<1x512xf32>
    %116 = vector.broadcast %115 : vector<1x512xf32> to vector<32x512xf32>
    %117 = arith.addf %114, %116 : vector<32x512xf32>
    %cst_46 = arith.constant 0.000000e+00 : f32
    %118 = vector.broadcast %cst_46 : f32 to vector<32x512xf32>
    %119 = arith.maximumf %117, %118 : vector<32x512xf32>
    %120 = arith.truncf %119 : vector<32x512xf32> to vector<32x512xbf16>
    %c0_47 = arith.constant 0 : index
    %c0_48 = arith.constant 0 : index
    %121 = vector.load %arg11[%c0_47, %c0_48] : memref<512x128xbf16, #tpu.memory_space<vmem>>, vector<512x128xbf16>
    %cst_49 = arith.constant dense<0.000000e+00> : vector<32x128xf32>
    %122 = tpu.matmul %120, %121, %cst_49 {dimension_numbers = #tpu.dot_dimension_numbers<[1], [0], [0], [1], [0, 0, 1, 1], [], []>} : vector<32x512xbf16>, vector<512x128xbf16>, vector<32x128xf32> -> vector<32x128xf32>
    %c0_50 = arith.constant 0 : index
    %c0_51 = arith.constant 0 : index
    %123 = vector.load %arg12[%c0_50, %c0_51] : memref<1x128xf32, #tpu.memory_space<vmem>>, vector<1x128xf32>
    %124 = vector.broadcast %123 : vector<1x128xf32> to vector<32x128xf32>
    %125 = arith.addf %122, %124 : vector<32x128xf32>
    %c0_52 = arith.constant 0 : index
    %c0_53 = arith.constant 0 : index
    %126 = vector.load %arg13[%c0_52, %c0_53] : memref<1x128xf32, #tpu.memory_space<vmem>>, vector<1x128xf32>
    %c0_54 = arith.constant 0 : index
    %c0_55 = arith.constant 0 : index
    %127 = vector.load %arg14[%c0_54, %c0_55] : memref<1x128xf32, #tpu.memory_space<vmem>>, vector<1x128xf32>
    %cst_56 = arith.constant dense<0.000000e+00> : vector<32xf32>
    %128 = vector.multi_reduction <add>, %125, %cst_56 [1] : vector<32x128xf32> to vector<32xf32>
    %129 = vector.shape_cast %128 : vector<32xf32> to vector<32x1xf32>
    %cst_57 = arith.constant 1.280000e+02 : f32
    %130 = vector.broadcast %cst_57 : f32 to vector<32x1xf32>
    %131 = arith.divf %129, %130 : vector<32x1xf32>
    %132 = vector.broadcast %131 : vector<32x1xf32> to vector<32x128xf32>
    %133 = arith.subf %125, %132 : vector<32x128xf32>
    %134 = arith.mulf %133, %133 : vector<32x128xf32>
    %cst_58 = arith.constant dense<0.000000e+00> : vector<32xf32>
    %135 = vector.multi_reduction <add>, %134, %cst_58 [1] : vector<32x128xf32> to vector<32xf32>
    %136 = vector.shape_cast %135 : vector<32xf32> to vector<32x1xf32>
    %cst_59 = arith.constant 1.280000e+02 : f32
    %137 = vector.broadcast %cst_59 : f32 to vector<32x1xf32>
    %138 = arith.divf %136, %137 : vector<32x1xf32>
    %cst_60 = arith.constant 9.99999974E-6 : f32
    %139 = vector.broadcast %cst_60 : f32 to vector<32x1xf32>
    %140 = arith.addf %138, %139 : vector<32x1xf32>
    %141 = math.rsqrt %140 : vector<32x1xf32>
    %142 = vector.broadcast %141 : vector<32x1xf32> to vector<32x128xf32>
    %143 = arith.mulf %133, %142 : vector<32x128xf32>
    %144 = vector.broadcast %126 : vector<1x128xf32> to vector<32x128xf32>
    %145 = arith.mulf %143, %144 : vector<32x128xf32>
    %146 = vector.broadcast %127 : vector<1x128xf32> to vector<32x128xf32>
    %147 = arith.addf %145, %146 : vector<32x128xf32>
    %148 = arith.addf %89, %147 : vector<32x128xf32>
    %c0_61 = arith.constant 0 : index
    %c0_62 = arith.constant 0 : index
    %c0_63 = arith.constant 0 : index
    %149 = vector.load %arg15[%c0_61, %c0_62, %c0_63] : memref<1x32x128xf32, #tpu.memory_space<vmem>>, vector<1x32x128xf32>
    %150 = vector.shape_cast %149 : vector<1x32x128xf32> to vector<32x128xf32>
    %151 = vector.shape_cast %148 : vector<32x128xf32> to vector<1x32x128xf32>
    tpu.vector_store %arg15[%c0_61, %c0_62, %c0_63], %151 {strides = array<i32>} : memref<1x32x128xf32, #tpu.memory_space<vmem>>, vector<1x32x128xf32>,
    return
  }
  func.func @transform_0(%arg0: i32) -> (i32, i32, i32) {
    %c0_i32 = arith.constant 0 : i32
    %c0_i32_0 = arith.constant 0 : i32
    %c0_i32_1 = arith.constant 0 : i32
    return %arg0, %c0_i32, %c0_i32_0 : i32, i32, i32
  }
  func.func @transform_1(%arg0: i32) -> (i32, i32) {
    %c0_i32 = arith.constant 0 : i32
    %c0_i32_0 = arith.constant 0 : i32
    %c0_i32_1 = arith.constant 0 : i32
    return %c0_i32, %c0_i32_0 : i32, i32
  }
  func.func @transform_2(%arg0: i32) -> (i32, i32) {
    %c0_i32 = arith.constant 0 : i32
    %c0_i32_0 = arith.constant 0 : i32
    %c0_i32_1 = arith.constant 0 : i32
    return %c0_i32, %c0_i32_0 : i32, i32
  }
  func.func @transform_3(%arg0: i32) -> (i32, i32) {
    %c0_i32 = arith.constant 0 : i32
    %c0_i32_0 = arith.constant 0 : i32
    %c0_i32_1 = arith.constant 0 : i32
    return %c0_i32, %c0_i32_0 : i32, i32
  }
  func.func @transform_4(%arg0: i32) -> (i32, i32) {
    %c0_i32 = arith.constant 0 : i32
    %c0_i32_0 = arith.constant 0 : i32
    %c0_i32_1 = arith.constant 0 : i32
    return %c0_i32, %c0_i32_0 : i32, i32
  }
  func.func @transform_5(%arg0: i32) -> (i32, i32) {
    %c0_i32 = arith.constant 0 : i32
    %c0_i32_0 = arith.constant 0 : i32
    %c0_i32_1 = arith.constant 0 : i32
    return %c0_i32, %c0_i32_0 : i32, i32
  }
  func.func @transform_6(%arg0: i32) -> (i32, i32) {
    %c0_i32 = arith.constant 0 : i32
    %c0_i32_0 = arith.constant 0 : i32
    %c0_i32_1 = arith.constant 0 : i32
    return %c0_i32, %c0_i32_0 : i32, i32
  }
  func.func @transform_7(%arg0: i32) -> (i32, i32) {
    %c0_i32 = arith.constant 0 : i32
    %c0_i32_0 = arith.constant 0 : i32
    %c0_i32_1 = arith.constant 0 : i32
    return %c0_i32, %c0_i32_0 : i32, i32
  }
  func.func @transform_8(%arg0: i32) -> (i32, i32) {
    %c0_i32 = arith.constant 0 : i32
    %c0_i32_0 = arith.constant 0 : i32
    %c0_i32_1 = arith.constant 0 : i32
    return %c0_i32, %c0_i32_0 : i32, i32
  }
  func.func @transform_9(%arg0: i32) -> (i32, i32) {
    %c0_i32 = arith.constant 0 : i32
    %c0_i32_0 = arith.constant 0 : i32
    %c0_i32_1 = arith.constant 0 : i32
    return %c0_i32, %c0_i32_0 : i32, i32
  }
  func.func @transform_10(%arg0: i32) -> (i32, i32) {
    %c0_i32 = arith.constant 0 : i32
    %c0_i32_0 = arith.constant 0 : i32
    %c0_i32_1 = arith.constant 0 : i32
    return %c0_i32, %c0_i32_0 : i32, i32
  }
  func.func @transform_11(%arg0: i32) -> (i32, i32) {
    %c0_i32 = arith.constant 0 : i32
    %c0_i32_0 = arith.constant 0 : i32
    %c0_i32_1 = arith.constant 0 : i32
    return %c0_i32, %c0_i32_0 : i32, i32
  }
  func.func @transform_12(%arg0: i32) -> (i32, i32) {
    %c0_i32 = arith.constant 0 : i32
    %c0_i32_0 = arith.constant 0 : i32
    %c0_i32_1 = arith.constant 0 : i32
    return %c0_i32, %c0_i32_0 : i32, i32
  }
  func.func @transform_13(%arg0: i32) -> (i32, i32) {
    %c0_i32 = arith.constant 0 : i32
    %c0_i32_0 = arith.constant 0 : i32
    %c0_i32_1 = arith.constant 0 : i32
    return %c0_i32, %c0_i32_0 : i32, i32
  }
  func.func @transform_14(%arg0: i32) -> (i32, i32, i32) {
    %c0_i32 = arith.constant 0 : i32
    %c0_i32_0 = arith.constant 0 : i32
    %c0_i32_1 = arith.constant 0 : i32
    return %arg0, %c0_i32, %c0_i32_0 : i32, i32, i32
  }
}

</mosaic_0001>

<bundles_post_ra>
// kernel: tpu_custom_call.1
= control target key start
LH: loop header
LB: loop body
LE: loop exit
PB: predicated region body
PF: predicated region fallthrough
CT: control target
= control target key end

     0   :  { %s4006_s0 = inlined_call_operand.hbm [shape: f32[2,32,128], index: 0, kind: input, shape index: {}]   ;;  %s4007_s1 = inlined_call_operand.vmem [shape: f32[1,128], index: 1, kind: input, shape index: {}]   ;;  %s4008_s2 = inlined_call_operand.vmem [shape: f32[1,128], index: 2, kind: input, shape index: {}]   ;;  %s4009_s3 = inlined_call_operand.hbm [shape: bf16[128,768], index: 3, kind: input, shape index: {}]   ;;  %s4010_s4 = inlined_call_operand.hbm [shape: bf16[256,128], index: 4, kind: input, shape index: {}]   ;;  %s4011_s5 = inlined_call_operand.vmem [shape: f32[1,128], index: 5, kind: input, shape index: {}]   ;;  %s4012_s6 = inlined_call_operand.vmem [shape: f32[1,128], index: 6, kind: input, shape index: {}]   ;;  %s4013_s7 = inlined_call_operand.vmem [shape: f32[1,128], index: 7, kind: input, shape index: {}]   ;;  %s4014_s8 = inlined_call_operand.hbm [shape: bf16[128,512], index: 8, kind: input, shape index: {}]   ;;  %s4015_s9 = inlined_call_operand.vmem [shape: f32[1,512], index: 9, kind: input, shape index: {}]   ;;  %s4016_s10 = inlined_call_operand.hbm [shape: bf16[512,128], index: 10, kind: input, shape index: {}]   ;;  %s4017_s11 = inlined_call_operand.vmem [shape: f32[1,128], index: 11, kind: input, shape index: {}]   ;;  %s4018_s12 = inlined_call_operand.vmem [shape: f32[1,128], index: 12, kind: input, shape index: {}]   ;;  %s4019_s13 = inlined_call_operand.vmem [shape: f32[1,128], index: 13, kind: input, shape index: {}]   ;;  %s4020_s14 = inlined_call_operand.hbm [shape: f32[2,32,128], index: 14, kind: output, shape index: {}]  }
   0x1   :  { %4028 = sst [smem:[#allocation18_spill]] %s4009_s3 }
   0x2   :  { %4029 = sst [smem:[#allocation19_spill]] %s4010_s4 }
   0x3   :  { %4030 = sst [smem:[#allocation20_spill]] %s4014_s8 }
   0x4   :  { %4031 = sst [smem:[#allocation21_spill]] %s4016_s10 }
   0x5   :  { %4032 = sst [smem:[#allocation22_spill]] %s4019_s13 }
   0x6   :  { %4033 = sst [smem:[#allocation23_spill]] %s4020_s14 }
   0x7   :  { %19 = vsyncpa [#allocation3], 0 }
   0x8   :  { %21 = vsyncpa [#allocation3 + $0x1], 0 }
   0x9   :  { %22 = vsyncpa [#allocation6], 0 }
   0xa   :  { %23 = vsyncpa [#allocation9], 0 }
   0xb   :  { %24 = vsyncpa [#allocation4], 0 }
   0xc   :  { %26 = vsyncpa [#allocation4 + $0x1], 0  ;;  %s3574_s29 = smov 0   ;;  %s3576_s30 = smov 0  }
   0xd   :  { %s3578_s15 = smov 0   ;;  %s3580_s16 = smov 0  }
   0xe LB: > { %4034 = sst [smem:[#allocation16_spill]] %s3468_s29  ;;  %s3595_s17 = sadd.s32 4294967295, %s3480_s16   ;;  %s3480_s16 = sphi %s3580_s16, %s4063_s16   ;;  %s3476_s15 = sphi %s3578_s15, %s4062_s15   ;;  %s3472_s30 = sphi %s3576_s30, %s4061_s30   ;;  %s3468_s29 = sphi %s3574_s29, %s4060_s29  }
   0xf   : > { %s2622_s18 = sadd.s32 4294967294, %s3480_s16   ;;  %p52_p0 = scmp.ne.s32.totalorder %s3472_s30, %s3468_s29 }
  0x10   : > { %p4022_p1 = scmp.eq.s32.totalorder %s3595_s17, 0  ;;  %p355_p3 = scmp.eq.s32.totalorder %s2622_s18, 1 }
  0x11   : > { %p2623_p5 = scmp.ge.s32.totalorder %s3480_s16, 1  ;;  %p362_p7 = scmp.lt.s32.totalorder %s3480_s16, 3 }
  0x12   : > { %p3604_p4 = por %p4022_p1, %p52_p0  ;;  %p3609_p6 = por %p355_p3, %p52_p0 }
  0x13   : > { %p3614_p8 = pnand %p2623_p5, %p362_p7  ;;  %s3482_s22 = smov [#allocation5]  }
  0x14   : > { %s4035_s19 = scalar_select %p3604_p4, 1, 0 }
  0x15   : > { %s4036_s20 = scalar_select %p3609_p6, 1, 0 }
  0x16   : > { %s4038_s21 = scalar_select %p3614_p8, 1, 0 }
  0x17   : > { %4037 = sst [smem:[#allocation17_spill]] %s4036_s20  ;;  %s380_s23 = sshll.u32 %s3482_s22, 4  ;;  %s381_s23 = int_to_ptr.vmem [resolvable:$true] %s380_s23 }
  0x18   : > { %p2970_p9 = pneg %p3614_p8  ;;  %s3483_s25 = smov [#allocation8]  }
  0x19   : > { %s415_s26 = sshll.u32 %s3483_s25, 4  ;;  %s3287_s27 = scalar_lea.vmem %s381_s23, 6144  ;;  %s416_s26 = int_to_ptr.vmem [resolvable:$true] %s415_s26 }
  0x1a   : > { %p3623_p11 = pnand %p2970_p9, %p4022_p1  ;;  %p3288_p13 = scmp.ne.s32.totalorder %s381_s23, %s3287_s27 }
  0x1b   : > { %p3295_p5 = scmp.lt.s32.totalorder %s381_s23, %s381_s23  ;;  %p3296_p7 = scmp.lt.s32.totalorder %s3287_s27, %s3287_s27 }
  0x1c   : > { %p3278_p12 = pneg %p3623_p11 }
  0x1d   : > { %p3297_p10 = por %p3296_p7, %p3295_p5 }
  0x1e   : > { %p3290_p0 = pnand %p3288_p13, %p3278_p12 }
  0x20   : > { %p3291_p3 = pneg %p3290_p0 }
  0x22   : > { %p3298_p9 = pnand %p3297_p10, %p3291_p3 }
  0x24   : > { %3301 = shalt.err (!%p3298_p9)
}
  0x25   : > { %s3484_s28 = smov 384   ;;  %s3485_s18 = smov 24  }
  0x26   : > { %s4040_s3 = sld [smem:[#allocation18_spill]]  ;;  %s3313_s20 = scalar_lea.vmem %s416_s26, 4096 }
  0x27   : > { %p3314_p1 = scmp.ne.s32.totalorder %s416_s26, %s3313_s20  ;;  %p3321_p2 = scmp.lt.s32.totalorder %s416_s26, %s416_s26 }
  0x28   : > { %p3322_p6 = scmp.lt.s32.totalorder %s3313_s20, %s3313_s20 }
  0x29   : > { %p3316_p13 = pnand %p3314_p1, %p3278_p12 }
  0x2a   : > { %p3323_p5 = por %p3322_p6, %p3321_p2 }
  0x2b   : > { %p3317_p0 = pneg %p3316_p13 }
  0x2c   : > { %2973 = dma.hbm_to_vmem [thread:$0]  (!%p3623_p11), %s4040_s3, 6144, %s381_s23, [#allocation6], %s3484_s28, %s3484_s28, %s3485_s18  }
  0x2d   : > { %p3324_p10 = pnand %p3323_p5, %p3317_p0 }
  0x2f   : > { %3327 = shalt.err (!%p3324_p10)
}
  0x30   : > { %s3486_s27 = smov 256   ;;  %s3487_s29 = smov 16  }
  0x31   : > { %s4041_s8 = sld [smem:[#allocation20_spill]]  ;;  %s3488_s23 = smov [#allocation7]  }
  0x32   : > { %s393_s28 = sshll.u32 %s3488_s23, 4  ;;  %s394_s28 = int_to_ptr.vmem [resolvable:$true] %s393_s28 }
  0x33   : > { %s3339_s18 = scalar_lea.vmem %s394_s28, 2048  ;;  %p3347_p6 = scmp.lt.s32.totalorder %s394_s28, %s394_s28 }
  0x34   : > { %p3340_p1 = scmp.ne.s32.totalorder %s394_s28, %s3339_s18  ;;  %p3348_p7 = scmp.lt.s32.totalorder %s3339_s18, %s3339_s18 }
  0x36   : > { %p3342_p3 = pnand %p3340_p1, %p3278_p12  ;;  %p3349_p9 = por %p3348_p7, %p3347_p6 }
  0x37   : > { %2979 = dma.hbm_to_vmem [thread:$0]  (!%p3623_p11), %s4041_s8, 4096, %s416_s26, [#allocation9], %s3486_s27, %s3486_s27, %s3487_s29  }
  0x38   : > { %p3343_p2 = pneg %p3342_p3 }
  0x3a   : > { %p3350_p13 = pnand %p3349_p9, %p3343_p2 }
  0x3c   : > { %3353 = shalt.err (!%p3350_p13)
}
  0x3d   : > { %s3489_s20 = smov 64   ;;  %s3490_s22 = smov 4  }
  0x3e   : > { %s4042_s4 = sld [smem:[#allocation19_spill]]  ;;  %s3491_s29 = smov [#allocation10]  }
  0x3f   : > { %s431_s26 = sshll.u32 %s3491_s29, 4  ;;  %s432_s26 = int_to_ptr.vmem [resolvable:$true] %s431_s26 }
  0x40   : > { %s3365_s25 = scalar_lea.vmem %s432_s26, 4096  ;;  %p3373_p1 = scmp.lt.s32.totalorder %s432_s26, %s432_s26 }
  0x41   : > { %p3366_p0 = scmp.ne.s32.totalorder %s432_s26, %s3365_s25  ;;  %p3374_p3 = scmp.lt.s32.totalorder %s3365_s25, %s3365_s25 }
  0x43   : > { %p3368_p5 = pnand %p3366_p0, %p3278_p12  ;;  %p3375_p2 = por %p3374_p3, %p3373_p1 }
  0x44   : > { %2976 = dma.hbm_to_vmem [thread:$0]  (!%p3623_p11), %s4042_s4, 2048, %s394_s28, [#allocation6], %s3489_s20, %s3489_s20, %s3490_s22  }
  0x45   : > { %p3369_p10 = pneg %p3368_p5 }
  0x47   : > { %p3376_p6 = pnand %p3375_p2, %p3369_p10 }
  0x49   : > { %3379 = shalt.err (!%p3376_p6)
}
  0x4a   : > { %s4043_s10 = sld [smem:[#allocation21_spill]]  ;;  %s3662_s28 = sadd.s32 1, %s3480_s16  }
  0x4b   : > { %s39_s18 = sadd.s32 1, %s3476_s15  ;;  %s36_s24 = ssub.s32 %s3480_s16, %s3662_s28 }
  0x4c   : > { %p46_p12 = scmp.ne.s32.totalorder %s3476_s15, %s3472_s30  ;;  %p37_p7 = scmp.eq.s32.totalorder %s36_s24, 0 }
  0x4d   : > { %p47_p9 = scmp.eq.s32.totalorder %s3480_s16, 0  ;;  %p4044_p13 = scmp.eq.s32.totalorder %s3595_s17, 1 }
  0x4e   : > { %p2995_p5 = scmp.lt.s32.totalorder %s3480_s16, 2  ;;  %s454_s29 = sand.u32 1, %s3476_s15  }
  0x4f   : > { %p3672_p0 = por %p4044_p13, %p46_p12  ;;  %p48_p10 = por %p47_p9, %p46_p12 }
  0x50   : > { %2982 = dma.hbm_to_vmem [thread:$0]  (!%p3623_p11), %s4043_s10, 4096, %s432_s26, [#allocation9], %s3489_s20, %s3489_s20, %s3490_s22  }
  0x51   : > { %s4045_s13 = scalar_select %p3672_p0, 1, 0 }
  0x52   : > { %s3678_s14 = scalar_select %p37_p7, %s3476_s15, %s39_s18  }
  0x53   : > { %s2629_s25 = sshll.u32 %s454_s29, 5  ;;  %s2784_s20 = sshll.u32 %s3480_s16, 9 }
  0x54   : > { %s3685_s27 = scalar_lea.hbm %s4006_s0, %s2784_s20  ;;  %s458_s23 = scalar_lea.vmem [#allocation2], %s2629_s25 }
  0x55   : > { %s465_s24 = sshll.u32 %s458_s23, 4  ;;  %p3689_p11 = pnand %p2995_p5, %p48_p10  ;;  %s3687_s24 = int_to_ptr.vmem [resolvable:$true] %s465_s24 }
  0x56   : > { %s3693_s18 = scalar_lea.sflag [#allocation3], %s454_s29  ;;  %s3380_s4 = scalar_lea.hbm %s3685_s27, 512 }
  0x57   : > { %p3381_p1 = scmp.ne.s32.totalorder %s3685_s27, %s3380_s4  ;;  %p3382_p3 = pneg %p3689_p11 }
  0x58   : > { %s3385_s25 = scalar_lea.hbm %s4006_s0, 1024  ;;  %p3386_p12 = scmp.lt.s32.totalorder %s3685_s27, %s4006_s0 }
  0x59   : > { %p3383_p2 = pnand %p3382_p3, %p3381_p1  ;;  %p3387_p7 = scmp.lt.s32.totalorder %s3385_s25, %s3380_s4 }
  0x5b   : > { %p3384_p6 = pneg %p3383_p2  ;;  %p3388_p9 = por %p3387_p7, %p3386_p12 }
  0x5d   : > { %p3389_p13 = pnand %p3388_p9, %p3384_p6 }
  0x5f   : > { %3392 = shalt.err (!%p3389_p13)
}
  0x60   : > { %s3393_s29 = scalar_lea.vmem %s3687_s24, 512  ;;  %s3492_s8 = smov [#allocation2]  }
  0x61   : > { %p3394_p5 = scmp.ne.s32.totalorder %s3687_s24, %s3393_s29  ;;  %s3398_s10 = sshll.u32 %s3492_s8, 4  ;;  %s3399_s10 = int_to_ptr.vmem [resolvable:$false] %s3398_s10 }
  0x62   : > { %s3400_s20 = scalar_lea.vmem %s3399_s10, 1024  ;;  %p3401_p2 = scmp.lt.s32.totalorder %s3687_s24, %s3399_s10 }
  0x63   : > { %p3396_p10 = pnand %p3394_p5, %p3382_p3  ;;  %p3402_p0 = scmp.lt.s32.totalorder %s3400_s20, %s3393_s29 }
  0x65   : > { %p3397_p1 = pneg %p3396_p10  ;;  %p3403_p4 = por %p3402_p0, %p3401_p2 }
  0x67   : > { %p3404_p8 = pnand %p3403_p4, %p3397_p1 }
  0x69   : > { %3407 = shalt.err (!%p3404_p8)
}
  0x6a   : > { %s3493_s4 = smov 128   ;;  %s3494_s22 = smov 8  }
  0x6b   : > { %2986 = dma.hbm_to_vmem [thread:$0]  (!%p3689_p11), %s3685_s27, 512, %s3687_s24, %s3693_s18, %s3493_s4, %s3493_s4, %s3494_s22  }
  0x6c   : > { %p4047_p3 = scmp.ne.s32.totalorder %s4038_s21, 0 }
  0x6d   : > { %s3717_s8 = sand.u32 (!%p4047_p3), 1, %s3472_s30   ;;  %p4048_p4 = scmp.ne.s32.totalorder (!%p4047_p3), %s4035_s19, 0 }
  0x6e   : > { %477 = sbr.rel (%p4047_p3) target bundleno = 3173 (0xc65), region = 76  ;;  %s2633_s10 = sshll.u32 (!%p4047_p3), %s3717_s8, 5 }
  0x6f   : > { %s480_s25 = scalar_lea.sflag (!%p4047_p3), [#allocation3], %s3717_s8  ;;  %s3723_s26 = scalar_lea.vmem (!%p4047_p3), [#allocation2], %s2633_s10 }
  0x73   : > { %3451 = dma.done.wait (%p4048_p4), %s480_s25, 512  }
  0x74   : > { %3453 = vsyncadd (%p4048_p4), %s480_s25, 4294966784  ;;  %p4049_p8 = scmp.eq.s32.totalorder %s3595_s17, 0 }
  0x76   : > { %3455 = dma.done.wait (%p4049_p8), [#allocation6], 8192   ;;  %p4050_p0 = pmov %p4049_p8 }
  0x78   : > { %3457 = vsyncadd (%p4050_p0), [#allocation6], 4294959104  ;;  %p4051_p11 = pmov %p4050_p0 }
  0x79   : > { %p4052_p6 = pmov %p4050_p0 }
  0x7a   : > { %3459 = dma.done.wait (%p4051_p11), [#allocation9], 8192  }
  0x7b   : > { %3461 = vsyncadd (%p4052_p6), [#allocation9], 4294959104  ;;  %v545_v0 = vld [vmem:[%s3723_s26] sm:$0xff]  ;;  %v547_v1 = vld [vmem:[%s3723_s26 + $0x10] sm:$0xff]  ;;  %v3495_v46 = vmov 0   ;;  %vm1169_vm2 = vcmask 261120  }
  0x7c   : > { %v546_v2 = vld [vmem:[%s3723_s26 + $0x8] sm:$0xff]  ;;  %551 = vadd.xlane.f32.xlu0 %v545_v0  ;;  %555 = vadd.xlane.f32.xlu1 %v547_v1  ;;  %v548_v3 = vld [vmem:[%s3723_s26 + $0x18] sm:$0xff]  ;;  %s4053_s18 = sld [smem:[#allocation22_spill]]  ;;  %s543_s23 = scalar_lea.vmem [#allocation11], %s2633_s10 }
  0x7d   : > { %v3048_v4 = vld [vmem:[#allocation5 + $0x154] ss:$24 sps:$4 sm:$0xff]   ;;  %v3050_v5 = vld [vmem:[#allocation5 + $0x150] ss:$24 sps:$4 sm:$0xff]   ;;  %v3054_v24 = vld [vmem:[#allocation5 + $0x124] ss:$24 sps:$4 sm:$0xff]   ;;  %938 = vmatprep.mubr.bf16.mxu0 %v3495_v46  ;;  %991 = vmatprep.mubr.bf16.mxu1 %v3495_v46 }
  0x7e   : > { %v3051_v6 = vld [vmem:[#allocation5 + $0x15c] ss:$24 sps:$4 sm:$0xff]   ;;  %v3053_v7 = vld [vmem:[#allocation5 + $0x158] ss:$24 sps:$4 sm:$0xff]   ;;  %906 = vmatprep.subr.bf16.mxu0 %v3048_v4  ;;  %v3057_v26 = vld [vmem:[#allocation5 + $0x12c] ss:$24 sps:$4 sm:$0xff]  }
  0x7f   : > { %959 = vmatprep.subr.bf16.mxu1 %v3051_v6  ;;  %907 = vmatpush1.bf16.msra.mxu0 %v3050_v5  ;;  %v3056_v25 = vld [vmem:[#allocation5 + $0x120] ss:$24 sps:$4 sm:$0xff]   ;;  %v3060_v28 = vld [vmem:[#allocation5 + $0xf4] ss:$24 sps:$4 sm:$0xff]   ;;  %v3062_v29 = vld [vmem:[#allocation5 + $0xf0] ss:$24 sps:$4 sm:$0xff]  }
  0x80   : > { %553 = vadd.xlane.f32.xlu0 %v546_v2  ;;  %557 = vadd.xlane.f32.xlu1 %v548_v3  ;;  %v3059_v27 = vld [vmem:[#allocation5 + $0x128] ss:$24 sps:$4 sm:$0xff]   ;;  %v3063_v30 = vld [vmem:[#allocation5 + $0xfc] ss:$24 sps:$4 sm:$0xff]   ;;  %v3065_v31 = vld [vmem:[#allocation5 + $0xf8] ss:$24 sps:$4 sm:$0xff]  }
  0x81   : > { %960 = vmatpush1.bf16.msra.mxu1 %v3053_v7  ;;  %908 = vmatprep.subr.bf16.mxu0 %v3054_v24  ;;  %v3066_v32 = vld [vmem:[#allocation5 + $0xc4] ss:$24 sps:$4 sm:$0xff]   ;;  %v3068_v33 = vld [vmem:[#allocation5 + $0xc0] ss:$24 sps:$4 sm:$0xff]   ;;  %v3072_v36 = vld [vmem:[#allocation5 + $0x94] ss:$24 sps:$4 sm:$0xff]  }
  0x82   : > { %961 = vmatprep.subr.bf16.mxu1 %v3057_v26  ;;  %v3069_v34 = vld [vmem:[#allocation5 + $0xcc] ss:$24 sps:$4 sm:$0xff]   ;;  %v3071_v35 = vld [vmem:[#allocation5 + $0xc8] ss:$24 sps:$4 sm:$0xff]   ;;  %v3075_v38 = vld [vmem:[#allocation5 + $0x9c] ss:$24 sps:$4 sm:$0xff]  }
  0x83   : > { %909 = vmatpush1.bf16.msra.mxu0 %v3056_v25  ;;  %v3074_v37 = vld [vmem:[#allocation5 + $0x90] ss:$24 sps:$4 sm:$0xff]   ;;  %v3078_v40 = vld [vmem:[#allocation5 + $0x64] ss:$24 sps:$4 sm:$0xff]   ;;  %v3080_v42 = vld [vmem:[#allocation5 + $0x60] ss:$24 sps:$4 sm:$0xff]  }
  0x84   : > { %910 = vmatprep.subr.bf16.mxu0 %v3060_v28  ;;  %v3077_v39 = vld [vmem:[#allocation5 + $0x98] ss:$24 sps:$4 sm:$0xff]   ;;  %v3081_v41 = vld [vmem:[#allocation5 + $0x6c] ss:$24 sps:$4 sm:$0xff]   ;;  %v3083_v43 = vld [vmem:[#allocation5 + $0x68] ss:$24 sps:$4 sm:$0xff]  }
  0x85   : > { %962 = vmatpush1.bf16.msra.mxu1 %v3059_v27  ;;  %v3084_v44 = vld [vmem:[#allocation5 + $0x34] ss:$24 sps:$4 sm:$0xff]   ;;  %v3086_v47 = vld [vmem:[#allocation5 + $0x30] ss:$24 sps:$4 sm:$0xff]   ;;  %v3090_v49 = vld [vmem:[#allocation5 + $0x4] ss:$24 sps:$4 sm:$0xff]  }
  0x86   : > { %963 = vmatprep.subr.bf16.mxu1 %v3063_v30  ;;  %v3087_v45 = vld [vmem:[#allocation5 + $0x3c] ss:$24 sps:$4 sm:$0xff]   ;;  %v3089_v48 = vld [vmem:[#allocation5 + $0x38] ss:$24 sps:$4 sm:$0xff]   ;;  %v3093_v50 = vld [vmem:[#allocation5 + $0xc] ss:$24 sps:$4 sm:$0xff]  }
  0x87   : > { %911 = vmatpush1.bf16.msra.mxu0 %v3062_v29  ;;  %v3092_v51 = vld [vmem:[#allocation5] ss:$24 sps:$4 sm:$0xff]   ;;  %v3098_v53 = vld [vmem:[#allocation5 + $0x164] ss:$24 sps:$4 sm:$0xff]   ;;  %v3107_v27 = vld [vmem:[#allocation5 + $0xd4] ss:$24 sps:$4 sm:$0xff]  }
  0x88   : > { %912 = vmatprep.subr.bf16.mxu0 %v3066_v32  ;;  %v3095_v52 = vld [vmem:[#allocation5 + $0x8] ss:$24 sps:$4 sm:$0xff]   ;;  %v3104_v24 = vld [vmem:[#allocation5 + $0x104] ss:$24 sps:$4 sm:$0xff]   ;;  %s2785_s29 = sshll.u32 %s3595_s17, 9  ;;  %s2511_s20 = sshll.u32 %s543_s23, 4  ;;  %s3962_s20 = int_to_ptr.vmem [resolvable:$true] %s2511_s20 }
  0x89   : > { %964 = vmatpush1.bf16.msra.mxu1 %v3065_v31  ;;  %v2639_v4 = vld [vmem:[%s4007_s1] ss:$0 sm:$0xff]  ;;  %v3105_v28 = vld [vmem:[#allocation5 + $0xd0] ss:$24 sps:$4 sm:$0xff]   ;;  %v3110_v29 = vld [vmem:[#allocation5 + $0xa4] ss:$24 sps:$4 sm:$0xff]  }
  0x8a   : > { %965 = vmatprep.subr.bf16.mxu1 %v3069_v34  ;;  %v3108_v30 = vld [vmem:[#allocation5 + $0xa0] ss:$24 sps:$4 sm:$0xff]   ;;  %v3113_v31 = vld [vmem:[#allocation5 + $0x74] ss:$24 sps:$4 sm:$0xff]   ;;  %v3111_v32 = vld [vmem:[#allocation5 + $0x70] ss:$24 sps:$4 sm:$0xff]  }
  0x8b   : > { %913 = vmatpush1.bf16.msra.mxu0 %v3068_v33  ;;  %v3116_v33 = vld [vmem:[#allocation5 + $0x44] ss:$24 sps:$4 sm:$0xff]   ;;  %v3114_v34 = vld [vmem:[#allocation5 + $0x40] ss:$24 sps:$4 sm:$0xff]   ;;  %s4054_s10 = sld [smem:[#allocation23_spill]]  ;;  %s3408_s3 = scalar_lea.vmem %s3962_s20, 512 }
  0x8c   : > { %914 = vmatprep.subr.bf16.mxu0 %v3072_v36  ;;  %v3117_v36 = vld [vmem:[#allocation5 + $0x10] ss:$24 sps:$4 sm:$0xff]   ;;  %p3409_p12 = scmp.ne.s32.totalorder %s3962_s20, %s3408_s3  ;;  %p4055_p7 = scmp.ne.s32.totalorder %s4045_s13, 0 }
  0x8d   : > { %966 = vmatpush1.bf16.msra.mxu1 %v3071_v35  ;;  %v3119_v35 = vld [vmem:[#allocation5 + $0x14] ss:$24 sps:$4 sm:$0xff]   ;;  %s3496_s17 = smov [#allocation11]  }
  0x8e   : > { %967 = vmatprep.subr.bf16.mxu1 %v3075_v38  ;;  %p3410_p9 = pnand %p3409_p12, %p4055_p7  ;;  %s3412_s19 = sshll.u32 %s3496_s17, 4  ;;  %s3413_s19 = int_to_ptr.vmem [resolvable:$false] %s3412_s19 }
  0x8f   : > { %915 = vmatpush1.bf16.msra.mxu0 %v3074_v37  ;;  %s3414_s21 = scalar_lea.vmem %s3413_s19, 1024  ;;  %p3415_p5 = scmp.lt.s32.totalorder %s3962_s20, %s3413_s19 }
  0x90   : > { %916 = vmatprep.subr.bf16.mxu0 %v3078_v40  ;;  %p3411_p13 = pneg %p3410_p9  ;;  %p3416_p10 = scmp.lt.s32.totalorder %s3414_s21, %s3408_s3 }
  0x91   : > { %968 = vmatpush1.bf16.msra.mxu1 %v3077_v39  ;;  %s3960_s25 = scalar_lea.hbm %s4054_s10, %s2785_s29 }
  0x92   : > { %969 = vmatprep.subr.bf16.mxu1 %v3081_v41  ;;  %p3417_p1 = por %p3416_p10, %p3415_p5 }
  0x93   : > { %917 = vmatpush1.bf16.msra.mxu0 %v3080_v42 }
  0x94   : > { %918 = vmatprep.subr.bf16.mxu0 %v3084_v44  ;;  %p3418_p2 = pnand %p3417_p1, %p3411_p13 }
  0x95   : > { %970 = vmatpush1.bf16.msra.mxu1 %v3083_v43 }
  0x96   : > { %971 = vmatprep.subr.bf16.mxu1 %v3087_v45 }
  0x97   : > { %919 = vmatpush1.bf16.msra.mxu0 %v3086_v47 }
  0x98   : > { %920 = vmatprep.subr.bf16.mxu0 %v3090_v49 }
  0x99   : > { %972 = vmatpush1.bf16.msra.mxu1 %v3089_v48 }
  0x9a   : > { %973 = vmatprep.subr.bf16.mxu1 %v3093_v50 }
  0x9b   : > { %921 = vmatpush1.bf16.msra.mxu0 %v3092_v51 }
  0x9c   : > { %1012 = vmatprep.subr.bf16.mxu0 %v3098_v53 }
  0x9d   : > { %974 = vmatpush1.bf16.msra.mxu1 %v3095_v52 }
 0x105   : > { %v552_v8 = vpop.xlane.xlu0 %551  ;;  %v556_v9 = vpop.xlane.xlu1 %555 }
 0x106   : > { %v560_v10 = vmul.f32 0.0078125, %v552_v8  ;;  %v562_v11 = vmul.f32 0.0078125, %v556_v9  ;;  %v2640_v9 = vld [vmem:[%s4008_s2] ss:$0 sm:$0xff] }
 0x108   : > { %v3741_v12 = vsub.f32 %v545_v0, %v560_v10  ;;  %v3743_v13 = vsub.f32 %v547_v1, %v562_v11 }
 0x109   : > { %v554_v14 = vpop.xlane.xlu0 %553  ;;  %v558_v15 = vpop.xlane.xlu1 %557 }
 0x10a   : > { %v561_v16 = vmul.f32 0.0078125, %v554_v14  ;;  %v568_v17 = vmul.f32 %v3741_v12, %v3741_v12  ;;  %v563_v18 = vmul.f32 0.0078125, %v558_v15  ;;  %v570_v21 = vmul.f32 %v3743_v13, %v3743_v13 }
 0x10c   : > { %v3747_v19 = vsub.f32 %v546_v2, %v561_v16  ;;  %572 = vadd.xlane.f32.xlu0 %v568_v17  ;;  %v3749_v20 = vsub.f32 %v548_v3, %v563_v18  ;;  %v3096_v17 = vld [vmem:[#allocation5 + $0x160] ss:$24 sps:$4 sm:$0xff]  }
 0x10e   : > { %v569_v22 = vmul.f32 %v3747_v19, %v3747_v19  ;;  %v571_v23 = vmul.f32 %v3749_v20, %v3749_v20 }
 0x110   : > { %576 = vadd.xlane.f32.xlu0 %v570_v21  ;;  %574 = vadd.xlane.f32.xlu1 %v569_v22  ;;  %v3101_v21 = vld [vmem:[#allocation5 + $0x134] ss:$24 sps:$4 sm:$0xff]  }
 0x114   : > { %578 = vadd.xlane.f32.xlu1 %v571_v23  ;;  %v3099_v23 = vld [vmem:[#allocation5 + $0x130] ss:$24 sps:$4 sm:$0xff]  }
 0x195   : > { %v573_v54 = vpop.xlane.xlu0 %572 }
 0x196   : > { %v580_v55 = vmul.f32 0.0078125, %v573_v54 }
 0x198   : > { %v584_v56 = vadd.f32 1e-05, %v580_v55 }
 0x199   : > { %v575_v57 = vpop.xlane.xlu1 %574  ;;  %v577_v58 = vpop.xlane.xlu0 %576 }
 0x19a   : > { %3216 = vrsqrt.f32 %v584_v56  ;;  %v581_v59 = vmul.f32 0.0078125, %v575_v57  ;;  %v582_v60 = vmul.f32 0.0078125, %v577_v58 }
 0x19c   : > { %v585_v61 = vadd.f32 1e-05, %v581_v59  ;;  %v586_v62 = vadd.f32 1e-05, %v582_v60 }
 0x19d   : > { %v579_v63 = vpop.xlane.xlu1 %578 }
 0x19e   : > { %3218 = vrsqrt.f32 %v585_v61  ;;  %v583_v0 = vmul.f32 0.0078125, %v579_v63 }
 0x19f   : > { %3220 = vrsqrt.f32 %v586_v62 }
 0x1a0   : > { %v587_v1 = vadd.f32 1e-05, %v583_v0 }
 0x1a2   : > { %3222 = vrsqrt.f32 %v587_v1 }
 0x1a7   : > { %v3217_v2 = vpop.eup %3216 }
 0x1a8   : > { %v592_v3 = vmul.f32 %v3217_v2, %v3741_v12 }
 0x1aa   : > { %v602_v7 = vmul.f32 %v2639_v4, %v592_v3 }
 0x1ab   : > { %v3219_v5 = vpop.eup %3218 }
 0x1ac   : > { %v593_v6 = vmul.f32 %v3219_v5, %v3747_v19  ;;  %v3221_v8 = vpop.eup %3220  ;;  %v612_v14 = vadd.f32 %v2640_v9, %v602_v7 }
 0x1ad   : > { %v594_v16 = vmul.f32 %v3221_v8, %v3743_v13  ;;  %v3102_v13 = vld [vmem:[#allocation5 + $0x100] ss:$24 sps:$4 sm:$0xff]  }
 0x1ae   : > { %v603_v10 = vmul.f32 %v2639_v4, %v593_v6 }
 0x1af   : > { %v3223_v11 = vpop.eup %3222  ;;  %v604_v19 = vmul.f32 %v2639_v4, %v594_v16 }
 0x1b0   : > { %v613_v15 = vadd.f32 %v2640_v9, %v603_v10  ;;  %v595_v12 = vmul.f32 %v3223_v11, %v3749_v20  ;;  %v1065_v10 = vlaneseq }
 0x1b1   : > { %v614_v26 = vadd.f32 %v2640_v9, %v604_v19 }
 0x1b2   : > { %v616_v18 = vpack.c.bf16 %v613_v15, %v612_v14  ;;  %v605_v22 = vmul.f32 %v2639_v4, %v595_v12  ;;  %v3790_v11 = vshrl.u32 %v1065_v10, 7  ;;  %v3792_v15 = vand.u32 127, %v1065_v10 }
 0x1b4   : > { %939 = vmatmul.mubr.bf16.vlgmr.msra.gmra.mxu0 %v616_v18  ;;  %992 = vmatmul.mubr.bf16.vlgmr.msra.gmra.mxu1 %v616_v18  ;;  %v615_v25 = vadd.f32 %v2640_v9, %v605_v22  ;;  %v3795_v16 = vadd.s32 16, %v3790_v11  ;;  %vm1072_vm0 = vcmp.le.s32.totalorder %v3792_v15, %v3790_v11  ;;  %v3805_v19 = vadd.s32 24, %v3790_v11 }
 0x1b5   : > { %1013 = vmatpush1.bf16.msra.mxu0 %v3096_v17  ;;  %948 = vmatprep.mubr.bf16.mxu0 %v3495_v46  ;;  %v3800_v17 = vadd.s32 8, %v3790_v11 }
 0x1b6   : > { %1014 = vmatprep.subr.bf16.mxu0 %v3101_v21  ;;  %1001 = vmatprep.mubr.bf16.mxu1 %v3495_v46  ;;  %v617_v20 = vpack.c.bf16 %v615_v25, %v614_v26  ;;  %vm1074_vm1 = vcmp.le.s32.totalorder %v3792_v15, %v3795_v16  ;;  %vm1075_vm4 = vcmp.le.s32.totalorder %v3792_v15, %v3805_v19 }
 0x1b7   : > { %vm1073_vm3 = vcmp.le.s32.totalorder %v3792_v15, %v3800_v17 }
 0x1b9   : > { %1015 = vmatpush1.bf16.msra.mxu0 %v3099_v23 }
 0x1ba   : > { %1016 = vmatprep.subr.bf16.mxu0 %v3104_v24 }
 0x1bc   : > { %949 = vmatmul.mubr.bf16.gmra.mxu0 %v617_v20  ;;  %1002 = vmatmul.mubr.bf16.gmra.mxu1 %v617_v20 }
 0x1bd   : > { %1017 = vmatpush1.bf16.msra.mxu0 %v3102_v13  ;;  %1044 = vmatprep.mubr.bf16.mxu0 %v3495_v46 }
 0x1be   : > { %1018 = vmatprep.subr.bf16.mxu0 %v3107_v27 }
 0x1c1   : > { %1019 = vmatpush1.bf16.msra.mxu0 %v3105_v28 }
 0x1c2   : > { %1020 = vmatprep.subr.bf16.mxu0 %v3110_v29 }
 0x1c5   : > { %1021 = vmatpush1.bf16.msra.mxu0 %v3108_v30 }
 0x1c6   : > { %1022 = vmatprep.subr.bf16.mxu0 %v3113_v31 }
 0x1c9   : > { %1023 = vmatpush1.bf16.msra.mxu0 %v3111_v32 }
 0x1ca   : > { %1024 = vmatprep.subr.bf16.mxu0 %v3116_v33 }
 0x1cd   : > { %1025 = vmatpush1.bf16.msra.mxu0 %v3114_v34 }
 0x1ce   : > { %1026 = vmatprep.subr.bf16.mxu0 %v3119_v35 }
 0x1d1   : > { %1027 = vmatpush1.bf16.msra.mxu0 %v3117_v36 }
 0x1d4   : > { %1045 = vmatmul.mubr.bf16.vlgmr.msra.gmra.mxu0 %v616_v18 }
 0x1d5   : > { %1054 = vmatprep.mubr.bf16.mxu0 %v3495_v46 }
 0x1dc   : > { %1055 = vmatmul.mubr.bf16.gmra.mxu0 %v617_v20 }
 0x274   : > { %v940_v37 = vpop.f32.mrf.mxu0  ;;  %v993_v38 = vpop.f32.mrf.mxu1 }
 0x276   : > { %v3773_v39 = vpop.f32.mrf.mxu0  ;;  %v995_v40 = vpop.f32.mrf.mxu1 }
 0x278   : > { %v944_v41 = vpop.f32.mrf.mxu0  ;;  %v997_v42 = vpop.f32.mrf.mxu1 }
 0x279   : > { %v1108_v43 = vpack.c.bf16 %v944_v41, %v940_v37  ;;  %v1110_v57 = vpack.c.bf16 %v997_v42, %v993_v38 }
 0x27a   : > { %v3775_v44 = vpop.f32.mrf.mxu0  ;;  %v999_v45 = vpop.f32.mrf.mxu1 }
 0x27b   : > { %v1275_v47 = vpack.c.bf16 %v3775_v44, %v3773_v39  ;;  %v3779_v48 = vpack.c.bf16 %v999_v45, %v995_v40  ;;  %2882 = vmatprep.mubr.bf16.mxu1 %v1108_v43 }
 0x27c   : > { %v950_v49 = vpop.f32.mrf.mxu0  ;;  %v1003_v50 = vpop.f32.mrf.mxu1 }
 0x27e   : > { %v3781_v51 = vpop.f32.mrf.mxu0  ;;  %v1005_v52 = vpop.f32.mrf.mxu1 }
 0x280   : > { %v954_v53 = vpop.f32.mrf.mxu0  ;;  %v1007_v54 = vpop.f32.mrf.mxu1 }
 0x281   : > { %v1111_v55 = vpack.c.bf16 %v1007_v54, %v1003_v50  ;;  %v1109_v59 = vpack.c.bf16 %v954_v53, %v950_v49 }
 0x282   : > { %v3783_v56 = vpop.f32.mrf.mxu0  ;;  %v1009_v7 = vpop.f32.mrf.mxu1 }
 0x283   : > { %v1276_v58 = vpack.c.bf16 %v3783_v56, %v3781_v51  ;;  %2878 = vmatprep.subr.bf16.mxu1 %v1111_v55  ;;  %v3787_v9 = vpack.c.bf16 %v1009_v7, %v1005_v52 }
 0x284   : > { %2879 = vmatpush3.bf16.xpose.msra.mxu1 %v1111_v55 }
 0x285   : > { %2880 = vmatprep.subr.bf16.mxu1 %v1110_v57 }
 0x28c   : > { %2881 = vmatpush3.bf16.xpose.msra.mxu1 %v1110_v57 }
 0x293   : > { %2883 = vmatmul.mubr.bf16.vlgmr.msra.gmra.mxu1 %v1109_v59 }
 0x294   : > { %v1046_v60 = vpop.f32.mrf.mxu0 }
 0x296   : > { %v1048_v61 = vpop.f32.mrf.mxu0 }
 0x298   : > { %v1050_v62 = vpop.f32.mrf.mxu0 }
 0x299   : > { %v1216_v5 = vpack.c.bf16 %v1050_v62, %v1046_v60 }
 0x29a   : > { %v1052_v63 = vpop.f32.mrf.mxu0 }
 0x29b   : > { %v1382_v8 = vpack.c.bf16 %v1052_v63, %v1048_v61 }
 0x29c   : > { %v1056_v0 = vpop.f32.mrf.mxu0 }
 0x29e   : > { %v1058_v1 = vpop.f32.mrf.mxu0 }
 0x2a0   : > { %v1060_v2 = vpop.f32.mrf.mxu0 }
 0x2a1   : > { %v1217_v3 = vpack.c.bf16 %v1060_v2, %v1056_v0 }
 0x2a2   : > { %v1062_v4 = vpop.f32.mrf.mxu0 }
 0x2a3   : > { %v1383_v6 = vpack.c.bf16 %v1062_v4, %v1058_v1  ;;  %2886 = vmatprep.subr.bf16.mxu1 %v1217_v3 }
 0x2a4   : > { %2887 = vmatpush3.bf16.msra.mxu1 %v1217_v3 }
 0x2a5   : > { %2888 = vmatprep.subr.bf16.mxu1 %v1216_v5  ;;  %2902 = vmatprep.subr.bf16.mxu0 %v1383_v6 }
 0x2a6   : > { %2903 = vmatpush3.bf16.msra.mxu0 %v1383_v6 }
 0x2a7   : > { %2904 = vmatprep.subr.bf16.mxu0 %v1382_v8 }
 0x2a8   : > { %2889 = vmatpush3.bf16.msra.mxu1 %v1216_v5 }
 0x2a9   : > { %2894 = vmatprep.subr.bf16.mxu1 %v3787_v9 }
 0x2aa   : > { %2905 = vmatpush3.bf16.msra.mxu0 %v1382_v8 }
 0x353   : > { %v2884_v14 = vpop.f32.mrf.mxu1 }
 0x354   : > { %v1163_v18 = vmul.f32 0.088388346, %v2884_v14 }
 0x355   : > { %v1146_v12 = vpop.f32.mrf.mxu1 }
 0x356   : > { %v1161_v21 = vmul.f32 0.088388346, %v1146_v12  ;;  %v1167_v20 = vsel %vm1074_vm1, %v1163_v18, -1e+30 }
 0x357   : > { %v2885_v22 = vpop.f32.mrf.mxu1  ;;  %v1176_v28 = vsel %vm1169_vm2, %v1167_v20, -inf }
 0x358   : > { %v1165_v23 = vsel %vm1072_vm0, %v1161_v21, -1e+30  ;;  %v1164_v26 = vmul.f32 0.088388346, %v2885_v22 }
 0x359   : > { %v1149_v24 = vpop.f32.mrf.mxu1  ;;  %v1170_v25 = vsel %vm1169_vm2, %v1165_v23, -inf }
 0x35a   : > { %v1162_v13 = vmul.f32 0.088388346, %v1149_v24  ;;  %1171 = vmax.xlane.f32.xlu0 %v1170_v25  ;;  %v1168_v30 = vsel %vm1075_vm4, %v1164_v26, -1e+30 }
 0x35b   : > { %v1179_v31 = vsel %vm1169_vm2, %v1168_v30, -inf }
 0x35c   : > { %v1166_v27 = vsel %vm1073_vm3, %v1162_v13, -1e+30 }
 0x35d   : > { %v1173_v29 = vsel %vm1169_vm2, %v1166_v27, -inf }
 0x35e   : > { %1177 = vmax.xlane.f32.xlu0 %v1176_v28  ;;  %1174 = vmax.xlane.f32.xlu1 %v1173_v29 }
 0x362   : > { %1180 = vmax.xlane.f32.xlu1 %v1179_v31 }
 0x3e3   : > { %v1172_v32 = vpop.xlane.xlu0 %1171 }
 0x3e4   : > { %v1182_v33 = vsub.f32 %v1165_v23, %v1172_v32 }
 0x3e6   : > { %v1186_v34 = vmul.f32 1.442695, %v1182_v33 }
 0x3e7   : > { %v1178_v35 = vpop.xlane.xlu0 %1177  ;;  %v1175_v36 = vpop.xlane.xlu1 %1174 }
 0x3e8   : > { %3224 = vpow2.f32 %v1186_v34  ;;  %v1184_v37 = vsub.f32 %v1167_v20, %v1178_v35  ;;  %v1183_v38 = vsub.f32 %v1166_v27, %v1175_v36 }
 0x3ea   : > { %v1190_v40 = vmul.f32 1.442695, %v1184_v37  ;;  %v1188_v41 = vmul.f32 1.442695, %v1183_v38 }
 0x3eb   : > { %v1181_v42 = vpop.xlane.xlu1 %1180 }
 0x3ec   : > { %3226 = vpow2.f32 %v1190_v40  ;;  %v1185_v43 = vsub.f32 %v1168_v30, %v1181_v42 }
 0x3ed   : > { %3228 = vpow2.f32 %v1188_v41 }
 0x3ee   : > { %v1192_v45 = vmul.f32 1.442695, %v1185_v43 }
 0x3f0   : > { %3230 = vpow2.f32 %v1192_v45 }
 0x3f5   : > { %v3225_v49 = vpop.eup %3224 }
 0x3f6   : > { %v1194_v50 = vsel %vm1169_vm2, %v3225_v49, 0.0 }
 0x3f7   : > { %1195 = vadd.xlane.f32.xlu0 %v1194_v50 }
 0x3f9   : > { %v3227_v52 = vpop.eup %3226 }
 0x3fa   : > { %v3229_v53 = vpop.eup %3228  ;;  %v1200_v54 = vsel %vm1169_vm2, %v3227_v52, 0.0 }
 0x3fb   : > { %1201 = vadd.xlane.f32.xlu0 %v1200_v54  ;;  %v1197_v55 = vsel %vm1169_vm2, %v3229_v53, 0.0  ;;  %v3129_v54 = vld [vmem:[#allocation7 + $0x70] sm:$0xff]  }
 0x3fc   : > { %1198 = vadd.xlane.f32.xlu1 %v1197_v55  ;;  %v3130_v55 = vld [vmem:[#allocation7 + $0x68] sm:$0xff]  }
 0x3fd   : > { %v3231_v57 = vpop.eup %3230 }
 0x3fe   : > { %v1203_v59 = vsel %vm1169_vm2, %v3231_v57, 0.0 }
 0x400   : > { %1204 = vadd.xlane.f32.xlu1 %v1203_v59  ;;  %v3132_v59 = vld [vmem:[#allocation7 + $0x58] sm:$0xff]  }
 0x480   : > { %v1196_v60 = vpop.xlane.xlu0 %1195 }
 0x481   : > { %3232 = vrcp.f32 %v1196_v60  ;;  %v3133_v60 = vld [vmem:[#allocation7 + $0x50] sm:$0xff]  }
 0x484   : > { %v1202_v61 = vpop.xlane.xlu0 %1201 }
 0x485   : > { %v1199_v62 = vpop.xlane.xlu1 %1198 }
 0x486   : > { %3234 = vrcp.f32 %v1199_v62 }
 0x487   : > { %3236 = vrcp.f32 %v1202_v61 }
 0x489   : > { %v1205_v63 = vpop.xlane.xlu1 %1204 }
 0x48a   : > { %3238 = vrcp.f32 %v1205_v63 }
 0x48e   : > { %v3233_v0 = vpop.eup %3232 }
 0x48f   : > { %v1210_v2 = vmul.f32 %v3233_v0, %v3225_v49 }
 0x493   : > { %v3235_v1 = vpop.eup %3234 }
 0x494   : > { %v1211_v3 = vmul.f32 %v3235_v1, %v3229_v53  ;;  %v3237_v4 = vpop.eup %3236  ;;  %v3128_v53 = vld [vmem:[#allocation7 + $0x78] sm:$0xff]  }
 0x495   : > { %v1212_v7 = vmul.f32 %v3237_v4, %v3227_v52  ;;  %v3120_v52 = vld [vmem:[#allocation7 + $0x38] sm:$0xff]  }
 0x496   : > { %v1214_v5 = vpack.c.bf16 %v1211_v3, %v1210_v2  ;;  %2930 = vmatprep.subr.bf16.mxu0 %v3120_v52 }
 0x497   : > { %v3239_v6 = vpop.eup %3238 }
 0x498   : > { %2890 = vmatprep.mubr.msk.bf16.mxu1 %vm1169_vm2, %v1214_v5  ;;  %v1213_v8 = vmul.f32 %v3239_v6, %v3231_v57  ;;  %v3131_v57 = vld [vmem:[#allocation7 + $0x60] sm:$0xff]  }
 0x49a   : > { %v1215_v10 = vpack.c.bf16 %v1213_v8, %v1212_v7 }
 0x49c   : > { %2891 = vmatmul.mubr.msk.bf16.vlgmr.msra.gmra.mxu1 %vm1169_vm2, %v1215_v10 }
 0x49d   : > { %2895 = vmatpush3.bf16.xpose.msra.mxu1 %v3787_v9  ;;  %2898 = vmatprep.mubr.bf16.mxu1 %v1275_v47 }
 0x49e   : > { %2896 = vmatprep.subr.bf16.mxu1 %v3779_v48 }
 0x4a5   : > { %2897 = vmatpush3.bf16.xpose.msra.mxu1 %v3779_v48 }
 0x4a6   : > { %2910 = vmatprep.subr.bf16.mxu1 %v3128_v53 }
 0x4ac   : > { %2899 = vmatmul.mubr.bf16.vlgmr.msra.gmra.mxu1 %v1276_v58 }
 0x4ad   : > { %2911 = vmatpush3.bf16.msra.mxu1 %v3128_v53  ;;  %v3139_v53 = vld [vmem:[#allocation8 + $0xe8] ss:$16 sps:$4 sm:$0xff]  }
 0x4ae   : > { %2912 = vmatprep.subr.bf16.mxu1 %v3129_v54 }
 0x4b1   : > { %2913 = vmatpush3.bf16.msra.mxu1 %v3129_v54  ;;  %v3141_v54 = vld [vmem:[#allocation8 + $0xec] ss:$16 sps:$4 sm:$0xff]  }
 0x4b2   : > { %2914 = vmatprep.subr.bf16.mxu1 %v3130_v55 }
 0x4b5   : > { %2915 = vmatpush3.bf16.msra.mxu1 %v3130_v55 }
 0x4b6   : > { %2916 = vmatprep.subr.bf16.mxu1 %v3131_v57 }
 0x4b9   : > { %2917 = vmatpush3.bf16.msra.mxu1 %v3131_v57 }
 0x4ba   : > { %2918 = vmatprep.subr.bf16.mxu1 %v3132_v59 }
 0x4bd   : > { %2919 = vmatpush3.bf16.msra.mxu1 %v3132_v59 }
 0x4be   : > { %2920 = vmatprep.subr.bf16.mxu1 %v3133_v60 }
 0x4c1   : > { %2921 = vmatpush3.bf16.msra.mxu1 %v3133_v60 }
 0x55c   : > { %v3842_v14 = vpop.f32.mrf.mxu1 }
 0x55e   : > { %v3844_v12 = vpop.f32.mrf.mxu1 }
 0x560   : > { %v3846_v18 = vpop.f32.mrf.mxu1 }
 0x561   : > { %v1274_v9 = vpack.c.bf16 %v3846_v18, %v3842_v14 }
 0x562   : > { %v3850_v21 = vpop.f32.mrf.mxu1 }
 0x563   : > { %v1273_v39 = vpack.c.bf16 %v3850_v21, %v3844_v12  ;;  %v3134_v12 = vld [vmem:[#allocation7 + $0x48] sm:$0xff]   ;;  %v3135_v21 = vld [vmem:[#allocation7 + $0x40] sm:$0xff]  }
 0x564   : > { %2922 = vmatprep.subr.bf16.mxu1 %v3134_v12 }
 0x565   : > { %2923 = vmatpush3.bf16.msra.mxu1 %v3134_v12  ;;  %v3159_v12 = vld [vmem:[#allocation8 + $0x8c] ss:$16 sps:$4 sm:$0xff]  }
 0x566   : > { %2924 = vmatprep.subr.bf16.mxu1 %v3135_v21 }
 0x569   : > { %2925 = vmatpush3.bf16.msra.mxu1 %v3135_v21  ;;  %v3154_v21 = vld [vmem:[#allocation8 + $0x80] ss:$16 sps:$4 sm:$0xff]  }
 0x56c   : > { %v2900_v44 = vpop.f32.mrf.mxu1 }
 0x56d   : > { %v1330_v48 = vmul.f32 0.088388346, %v2900_v44 }
 0x56e   : > { %v1313_v47 = vpop.f32.mrf.mxu1 }
 0x56f   : > { %v1328_v22 = vmul.f32 0.088388346, %v1313_v47  ;;  %v1334_v26 = vsel %vm1074_vm1, %v1330_v48, -1e+30  ;;  %v3121_v47 = vld [vmem:[#allocation7 + $0x30] sm:$0xff]   ;;  %v3122_v48 = vld [vmem:[#allocation7 + $0x28] sm:$0xff]  }
 0x570   : > { %v2901_v51 = vpop.f32.mrf.mxu1  ;;  %v1342_v20 = vsel %vm1169_vm2, %v1334_v26, -inf }
 0x571   : > { %v1332_v56 = vsel %vm1072_vm0, %v1328_v22, -1e+30  ;;  %v1331_v24 = vmul.f32 0.088388346, %v2901_v51  ;;  %v3123_v22 = vld [vmem:[#allocation7 + $0x20] sm:$0xff]   ;;  %v3124_v51 = vld [vmem:[#allocation7 + $0x18] sm:$0xff]  }
 0x572   : > { %v1316_v58 = vpop.f32.mrf.mxu1  ;;  %v1336_v23 = vsel %vm1169_vm2, %v1332_v56, -inf }
 0x573   : > { %v1329_v25 = vmul.f32 0.088388346, %v1316_v58  ;;  %1337 = vmax.xlane.f32.xlu0 %v1336_v23  ;;  %v1335_v28 = vsel %vm1075_vm4, %v1331_v24, -1e+30  ;;  %v3126_v58 = vld [vmem:[#allocation7 + $0x8] sm:$0xff]   ;;  %v3127_v23 = vld [vmem:[#allocation7] sm:$0xff]  }
 0x574   : > { %v1345_v29 = vsel %vm1169_vm2, %v1335_v28, -inf }
 0x575   : > { %v1333_v13 = vsel %vm1073_vm3, %v1329_v25, -1e+30 }
 0x576   : > { %v1339_v27 = vsel %vm1169_vm2, %v1333_v13, -inf }
 0x577   : > { %1343 = vmax.xlane.f32.xlu0 %v1342_v20  ;;  %1340 = vmax.xlane.f32.xlu1 %v1339_v27 }
 0x57b   : > { %1346 = vmax.xlane.f32.xlu1 %v1345_v29 }
 0x5fc   : > { %v1338_v30 = vpop.xlane.xlu0 %1337 }
 0x5fd   : > { %v1348_v16 = vsub.f32 %v1332_v56, %v1338_v30  ;;  %v3125_v56 = vld [vmem:[#allocation7 + $0x10] sm:$0xff]  }
 0x5ff   : > { %v1352_v31 = vmul.f32 1.442695, %v1348_v16 }
 0x600   : > { %v1344_v32 = vpop.xlane.xlu0 %1343  ;;  %v1341_v33 = vpop.xlane.xlu1 %1340 }
 0x601   : > { %3240 = vpow2.f32 %v1352_v31  ;;  %v1350_v17 = vsub.f32 %v1334_v26, %v1344_v32  ;;  %v1349_v34 = vsub.f32 %v1333_v13, %v1341_v33  ;;  %v3272_v31 = vld [vmem:[%s3723_s26] sm:$0xff] }
 0x603   : > { %v1356_v35 = vmul.f32 1.442695, %v1350_v17  ;;  %v1354_v36 = vmul.f32 1.442695, %v1349_v34  ;;  %v2709_v34 = vld [vmem:[%s4011_s5] ss:$0 sm:$0xff] }
 0x604   : > { %v1347_v37 = vpop.xlane.xlu1 %1346 }
 0x605   : > { %3242 = vpow2.f32 %v1356_v35  ;;  %v1351_v38 = vsub.f32 %v1335_v28, %v1347_v37  ;;  %v3273_v35 = vld [vmem:[%s3723_s26 + $0x10] sm:$0xff] }
 0x606   : > { %3244 = vpow2.f32 %v1354_v36 }
 0x607   : > { %v1358_v40 = vmul.f32 1.442695, %v1351_v38 }
 0x609   : > { %3246 = vpow2.f32 %v1358_v40 }
 0x60e   : > { %v3241_v15 = vpop.eup %3240 }
 0x60f   : > { %v1360_v19 = vsel %vm1169_vm2, %v3241_v15, 0.0 }
 0x610   : > { %1361 = vadd.xlane.f32.xlu0 %v1360_v19 }
 0x612   : > { %v3243_v41 = vpop.eup %3242 }
 0x613   : > { %v3245_v42 = vpop.eup %3244  ;;  %v1366_v43 = vsel %vm1169_vm2, %v3243_v41, 0.0 }
 0x614   : > { %1367 = vadd.xlane.f32.xlu0 %v1366_v43  ;;  %v1363_v45 = vsel %vm1169_vm2, %v3245_v42, 0.0 }
 0x615   : > { %1364 = vadd.xlane.f32.xlu1 %v1363_v45 }
 0x616   : > { %v3247_v49 = vpop.eup %3246 }
 0x617   : > { %v1369_v50 = vsel %vm1169_vm2, %v3247_v49, 0.0 }
 0x619   : > { %1370 = vadd.xlane.f32.xlu1 %v1369_v50  ;;  %v3136_v50 = vld [vmem:[#allocation8 + $0xe0] ss:$16 sps:$4 sm:$0xff]  }
 0x699   : > { %v1362_v61 = vpop.xlane.xlu0 %1361 }
 0x69a   : > { %3248 = vrcp.f32 %v1362_v61 }
 0x69d   : > { %v1368_v62 = vpop.xlane.xlu0 %1367 }
 0x69e   : > { %v1365_v63 = vpop.xlane.xlu1 %1364 }
 0x69f   : > { %3250 = vrcp.f32 %v1365_v63 }
 0x6a0   : > { %3252 = vrcp.f32 %v1368_v62 }
 0x6a2   : > { %v1371_v0 = vpop.xlane.xlu1 %1370 }
 0x6a3   : > { %3254 = vrcp.f32 %v1371_v0 }
 0x6a7   : > { %v3249_v1 = vpop.eup %3248 }
 0x6a8   : > { %v1376_v3 = vmul.f32 %v3249_v1, %v3241_v15  ;;  %v3274_v15 = vld [vmem:[%s3723_s26 + $0x8] sm:$0xff] }
 0x6ac   : > { %v3251_v2 = vpop.eup %3250 }
 0x6ad   : > { %v1377_v4 = vmul.f32 %v3251_v2, %v3245_v42  ;;  %v3253_v5 = vpop.eup %3252 }
 0x6ae   : > { %v1378_v8 = vmul.f32 %v3253_v5, %v3243_v41  ;;  %v3275_v41 = vld [vmem:[%s3723_s26 + $0x18] sm:$0xff]  ;;  %s2498_s26 = scalar_lea.sflag [#allocation4], %s3717_s8 }
 0x6af   : > { %v1380_v6 = vpack.c.bf16 %v1377_v4, %v1376_v3 }
 0x6b0   : > { %v3255_v7 = vpop.eup %3254 }
 0x6b1   : > { %v1379_v10 = vmul.f32 %v3255_v7, %v3247_v49  ;;  %2906 = vmatprep.mubr.msk.bf16.mxu0 %vm1169_vm2, %v1380_v6 }
 0x6b3   : > { %v1381_v44 = vpack.c.bf16 %v1379_v10, %v1378_v8  ;;  %v3144_v10 = vld [vmem:[#allocation8 + $0xc4] ss:$16 sps:$4 sm:$0xff]  }
 0x6b5   : > { %2907 = vmatmul.mubr.msk.bf16.vlgmr.msra.gmra.mxu0 %vm1169_vm2, %v1381_v44  ;;  %v3147_v44 = vld [vmem:[#allocation8 + $0xcc] ss:$16 sps:$4 sm:$0xff]  }
 0x6b6   : > { %2931 = vmatpush3.bf16.msra.mxu0 %v3120_v52  ;;  %2946 = vmatprep.mubr.bf16.mxu0 %v1273_v39  ;;  %v3138_v52 = vld [vmem:[#allocation8 + $0xe4] ss:$16 sps:$4 sm:$0xff]  }
 0x6b7   : > { %2932 = vmatprep.subr.bf16.mxu0 %v3121_v47  ;;  %1932 = vmatprep.subr.bf16.mxu1 %v3138_v52 }
 0x6ba   : > { %2933 = vmatpush3.bf16.msra.mxu0 %v3121_v47  ;;  %v3142_v47 = vld [vmem:[#allocation8 + $0xc0] ss:$16 sps:$4 sm:$0xff]  }
 0x6bb   : > { %2934 = vmatprep.subr.bf16.mxu0 %v3122_v48 }
 0x6be   : > { %2935 = vmatpush3.bf16.msra.mxu0 %v3122_v48  ;;  %v3145_v48 = vld [vmem:[#allocation8 + $0xc8] ss:$16 sps:$4 sm:$0xff]  }
 0x6bf   : > { %2936 = vmatprep.subr.bf16.mxu0 %v3123_v22 }
 0x6c2   : > { %2937 = vmatpush3.bf16.msra.mxu0 %v3123_v22  ;;  %v3150_v22 = vld [vmem:[#allocation8 + $0xa4] ss:$16 sps:$4 sm:$0xff]  }
 0x6c3   : > { %2938 = vmatprep.subr.bf16.mxu0 %v3124_v51 }
 0x6c6   : > { %2939 = vmatpush3.bf16.msra.mxu0 %v3124_v51  ;;  %v3153_v51 = vld [vmem:[#allocation8 + $0xac] ss:$16 sps:$4 sm:$0xff]  }
 0x6c7   : > { %2940 = vmatprep.subr.bf16.mxu0 %v3125_v56 }
 0x6ca   : > { %2941 = vmatpush3.bf16.msra.mxu0 %v3125_v56  ;;  %v3148_v56 = vld [vmem:[#allocation8 + $0xa0] ss:$16 sps:$4 sm:$0xff]  }
 0x6cb   : > { %2942 = vmatprep.subr.bf16.mxu0 %v3126_v58 }
 0x6ce   : > { %2943 = vmatpush3.bf16.msra.mxu0 %v3126_v58  ;;  %v3151_v58 = vld [vmem:[#allocation8 + $0xa8] ss:$16 sps:$4 sm:$0xff]  }
 0x6cf   : > { %2944 = vmatprep.subr.bf16.mxu0 %v3127_v23 }
 0x6d2   : > { %2945 = vmatpush3.bf16.msra.mxu0 %v3127_v23  ;;  %v3156_v23 = vld [vmem:[#allocation8 + $0x84] ss:$16 sps:$4 sm:$0xff]  }
 0x6d3   : > { %1985 = vmatprep.subr.bf16.mxu0 %v3141_v54 }
 0x6d5   : > { %2947 = vmatmul.mubr.bf16.vlgmr.msra.gmra.mxu0 %v1274_v9 }
 0x6d6   : > { %2017 = vmatprep.mubr.bf16.mxu0 %v3495_v46  ;;  %1986 = vmatpush1.bf16.msra.mxu0 %v3139_v53 }
 0x6d7   : > { %1987 = vmatprep.subr.bf16.mxu0 %v3147_v44 }
 0x6da   : > { %1988 = vmatpush1.bf16.msra.mxu0 %v3145_v48  ;;  %v3186_v48 = vld [vmem:[#allocation10 + $0x38] sm:$0xff]  }
 0x6db   : > { %1989 = vmatprep.subr.bf16.mxu0 %v3153_v51  ;;  %v3188_v51 = vld [vmem:[#allocation10 + $0x70] sm:$0xff]  }
 0x6de   : > { %1990 = vmatpush1.bf16.msra.mxu0 %v3151_v58 }
 0x6df   : > { %1991 = vmatprep.subr.bf16.mxu0 %v3159_v12  ;;  %v3193_v12 = vld [vmem:[#allocation10 + $0xe8] sm:$0xff]  }
 0x775   : > { %v2908_v39 = vpop.f32.mrf.mxu0 }
 0x777   : > { %v1424_v24 = vpop.f32.mrf.mxu0 }
 0x779   : > { %v2909_v25 = vpop.f32.mrf.mxu0 }
 0x77a   : > { %v1440_v20 = vpack.c.bf16 %v2909_v25, %v2908_v39  ;;  %v3157_v39 = vld [vmem:[#allocation8 + $0x88] ss:$16 sps:$4 sm:$0xff]   ;;  %v3162_v25 = vld [vmem:[#allocation8 + $0x64] ss:$16 sps:$4 sm:$0xff]  }
 0x77b   : > { %v1427_v26 = vpop.f32.mrf.mxu0  ;;  %1992 = vmatpush1.bf16.msra.mxu0 %v3157_v39 }
 0x77c   : > { %v1439_v13 = vpack.c.bf16 %v1427_v26, %v1424_v24  ;;  %v3160_v24 = vld [vmem:[#allocation8 + $0x60] ss:$16 sps:$4 sm:$0xff]   ;;  %v3163_v26 = vld [vmem:[#allocation8 + $0x68] ss:$16 sps:$4 sm:$0xff]  }
 0x77e   : > { %2926 = vmatprep.mubr.bf16.mxu1 %v1439_v13  ;;  %v3165_v13 = vld [vmem:[#allocation8 + $0x6c] ss:$16 sps:$4 sm:$0xff]  }
 0x77f   : > { %2927 = vmatmul.mubr.bf16.vlgmr.msra.gmra.mxu1 %v1440_v20  ;;  %v3168_v20 = vld [vmem:[#allocation8 + $0x44] ss:$16 sps:$4 sm:$0xff]   ;;  %1993 = vmatprep.subr.bf16.mxu0 %v3165_v13 }
 0x780   : > { %1964 = vmatprep.mubr.bf16.mxu1 %v3495_v46  ;;  %1933 = vmatpush1.bf16.msra.mxu1 %v3136_v50  ;;  %v3197_v13 = vld [vmem:[#allocation10 + $0xe0] sm:$0xff]  }
 0x781   : > { %1934 = vmatprep.subr.bf16.mxu1 %v3144_v10  ;;  %1994 = vmatpush1.bf16.msra.mxu0 %v3163_v26  ;;  %v3196_v26 = vld [vmem:[#allocation10 + $0x60] sm:$0xff]  }
 0x784   : > { %1935 = vmatpush1.bf16.msra.mxu1 %v3142_v47 }
 0x785   : > { %1936 = vmatprep.subr.bf16.mxu1 %v3150_v22  ;;  %v3187_v22 = vld [vmem:[#allocation10 + $0xb8] sm:$0xff]  }
 0x788   : > { %1937 = vmatpush1.bf16.msra.mxu1 %v3148_v56 }
 0x789   : > { %1938 = vmatprep.subr.bf16.mxu1 %v3156_v23  ;;  %v3191_v23 = vld [vmem:[#allocation10 + $0xb0] sm:$0xff]  }
 0x78c   : > { %1939 = vmatpush1.bf16.msra.mxu1 %v3154_v21 }
 0x78d   : > { %1940 = vmatprep.subr.bf16.mxu1 %v3162_v25  ;;  %v3195_v25 = vld [vmem:[#allocation10 + $0xa8] sm:$0xff]  }
 0x790   : > { %1941 = vmatpush1.bf16.msra.mxu1 %v3160_v24  ;;  %v3194_v24 = vld [vmem:[#allocation10 + $0x28] sm:$0xff]  }
 0x791   : > { %1942 = vmatprep.subr.bf16.mxu1 %v3168_v20  ;;  %v3199_v20 = vld [vmem:[#allocation10 + $0xa0] sm:$0xff]  }
 0x795   : > { %v2948_v14 = vpop.f32.mrf.mxu0 }
 0x797   : > { %v1620_v18 = vpop.f32.mrf.mxu0 }
 0x799   : > { %v2949_v27 = vpop.f32.mrf.mxu0 }
 0x79b   : > { %v1623_v33 = vpop.f32.mrf.mxu0 }
 0x83f   : > { %v2928_v9 = vpop.f32.mrf.mxu1 }
 0x840   : > { %v1629_v29 = vadd.f32 %v2948_v14, %v2928_v9  ;;  %v3171_v14 = vld [vmem:[#allocation8 + $0x4c] ss:$16 sps:$4 sm:$0xff]   ;;  %v3169_v9 = vld [vmem:[#allocation8 + $0x48] ss:$16 sps:$4 sm:$0xff]  }
 0x841   : > { %v1523_v28 = vpop.f32.mrf.mxu1  ;;  %1995 = vmatprep.subr.bf16.mxu0 %v3171_v14  ;;  %v3200_v14 = vld [vmem:[#allocation10 + $0x58] sm:$0xff]  }
 0x842   : > { %v1621_v30 = vadd.f32 %v1620_v18, %v1523_v28  ;;  %v1637_v36 = vadd.f32 %v3273_v35, %v1629_v29  ;;  %v3166_v18 = vld [vmem:[#allocation8 + $0x40] ss:$16 sps:$4 sm:$0xff]   ;;  %v3177_v28 = vld [vmem:[#allocation8 + $0x2c] ss:$16 sps:$4 sm:$0xff]   ;;  %1996 = vmatpush1.bf16.msra.mxu0 %v3169_v9 }
 0x843   : > { %v2929_v16 = vpop.f32.mrf.mxu1  ;;  %1943 = vmatpush1.bf16.msra.mxu1 %v3166_v18  ;;  %v3172_v29 = vld [vmem:[#allocation8 + $0x20] ss:$16 sps:$4 sm:$0xff]   ;;  %1997 = vmatprep.subr.bf16.mxu0 %v3177_v28  ;;  %v3201_v18 = vld [vmem:[#allocation10 + $0xd8] sm:$0xff]  }
 0x844   : > { %v1635_v32 = vadd.f32 %v3272_v31, %v1621_v30  ;;  %v1632_v37 = vadd.f32 %v2949_v27, %v2929_v16  ;;  %v3894_v43 = vadd.f32 %v2709_v34, %v1637_v36  ;;  %v3174_v27 = vld [vmem:[#allocation8 + $0x24] ss:$16 sps:$4 sm:$0xff]   ;;  %v3175_v30 = vld [vmem:[#allocation8 + $0x28] ss:$16 sps:$4 sm:$0xff]   ;;  %v3183_v31 = vld [vmem:[#allocation8 + $0xc] ss:$16 sps:$4 sm:$0xff]  }
 0x845   : > { %v1526_v17 = vpop.f32.mrf.mxu1  ;;  %1944 = vmatprep.subr.bf16.mxu1 %v3174_v27  ;;  %v3180_v16 = vld [vmem:[#allocation8 + $0x4] ss:$16 sps:$4 sm:$0xff]   ;;  %v3202_v9 = vld [vmem:[#allocation10 + $0x18] sm:$0xff]  }
 0x846   : > { %v1624_v38 = vadd.f32 %v1623_v33, %v1526_v17  ;;  %v3889_v40 = vadd.f32 %v2709_v34, %v1635_v32  ;;  %v1638_v42 = vadd.f32 %v3275_v41, %v1632_v37  ;;  %1998 = vmatpush1.bf16.msra.mxu0 %v3175_v30  ;;  %v3178_v32 = vld [vmem:[#allocation8] ss:$16 sps:$4 sm:$0xff]   ;;  %v3181_v33 = vld [vmem:[#allocation8 + $0x8] ss:$16 sps:$4 sm:$0xff]  }
 0x847   : > { %1945 = vmatpush1.bf16.msra.mxu1 %v3172_v29  ;;  %1999 = vmatprep.subr.bf16.mxu0 %v3183_v31  ;;  %v3184_v17 = vld [vmem:[#allocation10 + $0x78] sm:$0xff]   ;;  %v3204_v28 = vld [vmem:[#allocation10 + $0x50] sm:$0xff]   ;;  %v3208_v31 = vld [vmem:[#allocation10 + $0x48] sm:$0xff]  }
 0x848   : > { %v1636_v19 = vadd.f32 %v3274_v15, %v1624_v38  ;;  %1652 = vadd.xlane.f32.xlu0 %v3889_v40  ;;  %v3900_v49 = vadd.f32 %v2709_v34, %v1638_v42  ;;  %1946 = vmatprep.subr.bf16.mxu1 %v3180_v16  ;;  %v3203_v27 = vld [vmem:[#allocation10 + $0x98] sm:$0xff]   ;;  %v3205_v29 = vld [vmem:[#allocation10 + $0xd0] sm:$0xff]  }
 0x849   : > { %v3206_v30 = vld [vmem:[#allocation10 + $0x10] sm:$0xff]  }
 0x84a   : > { %v3896_v45 = vadd.f32 %v2709_v34, %v1636_v19  ;;  %2000 = vmatpush1.bf16.msra.mxu0 %v3181_v33  ;;  %v3185_v34 = vld [vmem:[#allocation10 + $0xf8] sm:$0xff]   ;;  %v3207_v16 = vld [vmem:[#allocation10 + $0x90] sm:$0xff]   ;;  %v3210_v33 = vld [vmem:[#allocation10 + $0x8] sm:$0xff]  }
 0x84b   : > { %1947 = vmatpush1.bf16.msra.mxu1 %v3178_v32  ;;  %2850 = vmatprep.subr.bf16.mxu0 %v3185_v34  ;;  %v3209_v32 = vld [vmem:[#allocation10 + $0xc8] sm:$0xff]   ;;  %v3212_v34 = vld [vmem:[#allocation10 + $0x40] sm:$0xff]  }
 0x84c   : > { %1656 = vadd.xlane.f32.xlu0 %v3894_v43  ;;  %1654 = vadd.xlane.f32.xlu1 %v3896_v45 }
 0x84d   : > { %2822 = vmatprep.subr.bf16.mxu1 %v3184_v17  ;;  %v3211_v17 = vld [vmem:[#allocation10 + $0x88] sm:$0xff]  }
 0x850   : > { %1658 = vadd.xlane.f32.xlu1 %v3900_v49 }
 0x8d1   : > { %v1653_v55 = vpop.xlane.xlu0 %1652 }
 0x8d2   : > { %v1660_v57 = vmul.f32 0.0078125, %v1653_v55 }
 0x8d4   : > { %v3904_v59 = vsub.f32 %v3889_v40, %v1660_v57 }
 0x8d5   : > { %v1657_v60 = vpop.xlane.xlu0 %1656  ;;  %v1655_v61 = vpop.xlane.xlu1 %1654 }
 0x8d6   : > { %v1662_v62 = vmul.f32 0.0078125, %v1657_v60  ;;  %v1661_v63 = vmul.f32 0.0078125, %v1655_v61  ;;  %v1668_v0 = vmul.f32 %v3904_v59, %v3904_v59  ;;  %v2710_v60 = vld [vmem:[%s4012_s6] ss:$0 sm:$0xff] }
 0x8d8   : > { %v3909_v1 = vsub.f32 %v3894_v43, %v1662_v62  ;;  %v3912_v2 = vsub.f32 %v3896_v45, %v1661_v63  ;;  %1672 = vadd.xlane.f32.xlu0 %v1668_v0 }
 0x8d9   : > { %v1659_v3 = vpop.xlane.xlu1 %1658 }
 0x8da   : > { %v1663_v4 = vmul.f32 0.0078125, %v1659_v3  ;;  %v1670_v5 = vmul.f32 %v3909_v1, %v3909_v1  ;;  %v1669_v6 = vmul.f32 %v3912_v2, %v3912_v2  ;;  %v2711_v3 = vld [vmem:[%s4013_s7] ss:$0 sm:$0xff] }
 0x8dc   : > { %v3919_v7 = vsub.f32 %v3900_v49, %v1663_v4  ;;  %1676 = vadd.xlane.f32.xlu0 %v1670_v5  ;;  %1674 = vadd.xlane.f32.xlu1 %v1669_v6 }
 0x8de   : > { %v1671_v8 = vmul.f32 %v3919_v7, %v3919_v7 }
 0x8e0   : > { %1678 = vadd.xlane.f32.xlu1 %v1671_v8 }
 0x961   : > { %v1673_v35 = vpop.xlane.xlu0 %1672 }
 0x962   : > { %v1680_v36 = vmul.f32 0.0078125, %v1673_v35  ;;  %v3213_v35 = vld [vmem:[#allocation10 + $0xc0] sm:$0xff]  }
 0x964   : > { %v1684_v37 = vadd.f32 1e-05, %v1680_v36  ;;  %v3214_v36 = vld [vmem:[#allocation10] sm:$0xff]  }
 0x965   : > { %v1677_v38 = vpop.xlane.xlu0 %1676  ;;  %v1675_v15 = vpop.xlane.xlu1 %1674 }
 0x966   : > { %3256 = vrsqrt.f32 %v1684_v37  ;;  %v1682_v19 = vmul.f32 0.0078125, %v1677_v38  ;;  %v1681_v41 = vmul.f32 0.0078125, %v1675_v15  ;;  %v3215_v37 = vld [vmem:[#allocation10 + $0x80] sm:$0xff]   ;;  %v1758_v38 = vsub.s32 1, %v3790_v11 }
 0x967   : > { %v1766_v15 = vsub.s32 3, %v3790_v11 }
 0x968   : > { %v1685_v42 = vadd.f32 1e-05, %v1681_v41  ;;  %v1686_v50 = vadd.f32 1e-05, %v1682_v19  ;;  %v1754_v19 = vsub.s32 0, %v3790_v11  ;;  %v1762_v41 = vsub.s32 2, %v3790_v11 }
 0x969   : > { %v1679_v52 = vpop.xlane.xlu1 %1678 }
 0x96a   : > { %v1683_v53 = vmul.f32 0.0078125, %v1679_v52  ;;  %3258 = vrsqrt.f32 %v1685_v42  ;;  %v1750_v42 = vld [vmem:[%s4015_s9] sm:$0xf] }
 0x96b   : > { %3260 = vrsqrt.f32 %v1686_v50 }
 0x96c   : > { %v1687_v54 = vadd.f32 1e-05, %v1683_v53  ;;  %v1759_v53 = vrot.slane %v1750_v42, %v1758_v38 }
 0x96e   : > { %3262 = vrsqrt.f32 %v1687_v54  ;;  %v1767_v54 = vrot.slane %v1750_v42, %v1766_v15 }
 0x973   : > { %v3257_v55 = vpop.eup %3256 }
 0x974   : > { %v1692_v57 = vmul.f32 %v3257_v55, %v3904_v59  ;;  %v1755_v55 = vrot.slane %v1750_v42, %v1754_v19 }
 0x976   : > { %v1702_v63 = vmul.f32 %v2710_v60, %v1692_v57  ;;  %v1763_v57 = vrot.slane %v1750_v42, %v1762_v41 }
 0x977   : > { %v3259_v61 = vpop.eup %3258 }
 0x978   : > { %v1693_v62 = vmul.f32 %v3259_v61, %v3912_v2  ;;  %v3261_v0 = vpop.eup %3260  ;;  %v1712_v8 = vadd.f32 %v2711_v3, %v1702_v63  ;;  %v3189_v2 = vld [vmem:[#allocation10 + $0xf0] sm:$0xff]  }
 0x979   : > { %v1694_v59 = vmul.f32 %v3261_v0, %v3909_v1  ;;  %v3192_v1 = vld [vmem:[#allocation10 + $0x68] sm:$0xff]  }
 0x97a   : > { %v1703_v5 = vmul.f32 %v2710_v60, %v1693_v62 }
 0x97b   : > { %v3263_v4 = vpop.eup %3262  ;;  %v1704_v56 = vmul.f32 %v2710_v60, %v1694_v59 }
 0x97c   : > { %v1695_v6 = vmul.f32 %v3263_v4, %v3919_v7  ;;  %v1713_v10 = vadd.f32 %v2711_v3, %v1703_v5  ;;  %v3190_v7 = vld [vmem:[#allocation10 + $0x30] sm:$0xff]  }
 0x97d   : > { %v1714_v21 = vadd.f32 %v2711_v3, %v1704_v56 }
 0x97e   : > { %v1716_v44 = vpack.c.bf16 %v1713_v10, %v1712_v8  ;;  %v1705_v47 = vmul.f32 %v2710_v60, %v1695_v6 }
 0x980   : > { %1965 = vmatmul.mubr.bf16.vlgmr.msra.gmra.mxu1 %v1716_v44  ;;  %2018 = vmatmul.mubr.bf16.vlgmr.msra.gmra.mxu0 %v1716_v44  ;;  %v1715_v58 = vadd.f32 %v2711_v3, %v1705_v47 }
 0x981   : > { %1974 = vmatprep.mubr.bf16.mxu1 %v3495_v46  ;;  %2027 = vmatprep.mubr.bf16.mxu0 %v3495_v46  ;;  %v3198_v46 = vld [vmem:[#allocation10 + $0x20] sm:$0xff]  }
 0x982   : > { %2823 = vmatpush3.bf16.msra.mxu1 %v3186_v48  ;;  %2851 = vmatpush3.bf16.msra.mxu0 %v3187_v22  ;;  %v1717_v39 = vpack.c.bf16 %v1715_v58, %v1714_v21 }
 0x983   : > { %2824 = vmatprep.subr.bf16.mxu1 %v3188_v51  ;;  %2852 = vmatprep.subr.bf16.mxu0 %v3189_v2 }
 0x986   : > { %2825 = vmatpush3.bf16.msra.mxu1 %v3190_v7  ;;  %2853 = vmatpush3.bf16.msra.mxu0 %v3191_v23 }
 0x987   : > { %2826 = vmatprep.subr.bf16.mxu1 %v3192_v1  ;;  %2854 = vmatprep.subr.bf16.mxu0 %v3193_v12 }
 0x988   : > { %1975 = vmatmul.mubr.bf16.gmra.mxu1 %v1717_v39  ;;  %2028 = vmatmul.mubr.bf16.gmra.mxu0 %v1717_v39 }
 0x98a   : > { %2827 = vmatpush3.bf16.msra.mxu1 %v3194_v24  ;;  %2855 = vmatpush3.bf16.msra.mxu0 %v3195_v25 }
 0x98b   : > { %2828 = vmatprep.subr.bf16.mxu1 %v3196_v26  ;;  %2856 = vmatprep.subr.bf16.mxu0 %v3197_v13 }
 0x98e   : > { %2829 = vmatpush3.bf16.msra.mxu1 %v3198_v46  ;;  %2857 = vmatpush3.bf16.msra.mxu0 %v3199_v20 }
 0x98f   : > { %2830 = vmatprep.subr.bf16.mxu1 %v3200_v14  ;;  %2858 = vmatprep.subr.bf16.mxu0 %v3201_v18 }
 0x992   : > { %2831 = vmatpush3.bf16.msra.mxu1 %v3202_v9  ;;  %2859 = vmatpush3.bf16.msra.mxu0 %v3203_v27 }
 0x993   : > { %2832 = vmatprep.subr.bf16.mxu1 %v3204_v28  ;;  %2860 = vmatprep.subr.bf16.mxu0 %v3205_v29 }
 0x996   : > { %2833 = vmatpush3.bf16.msra.mxu1 %v3206_v30  ;;  %2861 = vmatpush3.bf16.msra.mxu0 %v3207_v16 }
 0x997   : > { %2834 = vmatprep.subr.bf16.mxu1 %v3208_v31  ;;  %2862 = vmatprep.subr.bf16.mxu0 %v3209_v32 }
 0x99a   : > { %2835 = vmatpush3.bf16.msra.mxu1 %v3210_v33  ;;  %2863 = vmatpush3.bf16.msra.mxu0 %v3211_v17 }
 0x99b   : > { %2836 = vmatprep.subr.bf16.mxu1 %v3212_v34  ;;  %2864 = vmatprep.subr.bf16.mxu0 %v3213_v35 }
 0x99e   : > { %2837 = vmatpush3.bf16.msra.mxu1 %v3214_v36  ;;  %2865 = vmatpush3.bf16.msra.mxu0 %v3215_v37 }
 0xa40   : > { %v1966_v50 = vpop.f32.mrf.mxu1  ;;  %v2019_v52 = vpop.f32.mrf.mxu0 }
 0xa41   : > { %v1967_v6 = vadd.f32 %v1966_v50, %v1755_v55  ;;  %v2020_v11 = vadd.f32 %v2019_v52, %v1763_v57 }
 0xa42   : > { %v1968_v60 = vpop.f32.mrf.mxu1  ;;  %v2021_v61 = vpop.f32.mrf.mxu0 }
 0xa43   : > { %v1969_v0 = vadd.f32 %v1968_v60, %v1759_v53  ;;  %v2022_v3 = vadd.f32 %v2021_v61, %v1767_v54  ;;  %v2038_v23 = vmax.f32 %v1967_v6, 0.0  ;;  %v2040_v1 = vmax.f32 %v2020_v11, 0.0 }
 0xa44   : > { %v1970_v62 = vpop.f32.mrf.mxu1  ;;  %v2023_v63 = vpop.f32.mrf.mxu0 }
 0xa45   : > { %v1971_v4 = vadd.f32 %v1970_v62, %v1755_v55  ;;  %v2024_v5 = vadd.f32 %v2023_v63, %v1763_v57  ;;  %v2039_v2 = vmax.f32 %v1969_v0, 0.0  ;;  %v2041_v56 = vmax.f32 %v2022_v3, 0.0 }
 0xa46   : > { %v1972_v8 = vpop.f32.mrf.mxu1  ;;  %v2025_v10 = vpop.f32.mrf.mxu0 }
 0xa47   : > { %v1973_v59 = vadd.f32 %v1972_v8, %v1759_v53  ;;  %v2026_v44 = vadd.f32 %v2025_v10, %v1767_v54  ;;  %v2042_v47 = vmax.f32 %v1971_v4, 0.0  ;;  %v2044_v48 = vmax.f32 %v2024_v5, 0.0 }
 0xa48   : > { %v1976_v22 = vpop.f32.mrf.mxu1  ;;  %v2029_v51 = vpop.f32.mrf.mxu0 }
 0xa49   : > { %v2043_v58 = vmax.f32 %v1973_v59, 0.0  ;;  %v2045_v7 = vmax.f32 %v2026_v44, 0.0  ;;  %v2054_v25 = vpack.c.bf16 %v2042_v47, %v2038_v23  ;;  %v2056_v26 = vpack.c.bf16 %v2044_v48, %v2040_v1 }
 0xa4a   : > { %v1978_v12 = vpop.f32.mrf.mxu1  ;;  %v2031_v21 = vpop.f32.mrf.mxu0  ;;  %v1977_v27 = vadd.f32 %v1976_v22, %v1755_v55  ;;  %v2030_v28 = vadd.f32 %v2029_v51, %v1763_v57 }
 0xa4b   : > { %v2055_v39 = vpack.c.bf16 %v2043_v58, %v2039_v2  ;;  %v2057_v24 = vpack.c.bf16 %v2045_v7, %v2041_v56  ;;  %v1979_v13 = vadd.f32 %v1978_v12, %v1759_v53  ;;  %v2032_v14 = vadd.f32 %v2031_v21, %v1767_v54 }
 0xa4c   : > { %v1980_v46 = vpop.f32.mrf.mxu1  ;;  %v2033_v20 = vpop.f32.mrf.mxu0  ;;  %v2046_v37 = vmax.f32 %v1977_v27, 0.0  ;;  %v2048_v38 = vmax.f32 %v2030_v28, 0.0 }
 0xa4d   : > { %v1981_v18 = vadd.f32 %v1980_v46, %v1755_v55  ;;  %v2034_v9 = vadd.f32 %v2033_v20, %v1763_v57  ;;  %2357 = vmatprep.mubr.bf16.mxu1 %v2055_v39  ;;  %2406 = vmatprep.mubr.bf16.mxu0 %v2057_v24  ;;  %v2047_v17 = vmax.f32 %v1979_v13, 0.0  ;;  %v2049_v34 = vmax.f32 %v2032_v14, 0.0 }
 0xa4e   : > { %v1982_v29 = vpop.f32.mrf.mxu1  ;;  %v2035_v30 = vpop.f32.mrf.mxu0  ;;  %2358 = vmatmul.mubr.bf16.vlgmr.msra.gmra.mxu1 %v2054_v25  ;;  %2407 = vmatmul.mubr.bf16.vlgmr.msra.gmra.mxu0 %v2056_v26 }
 0xa4f   : > { %v1983_v16 = vadd.f32 %v1982_v29, %v1759_v53  ;;  %v2036_v31 = vadd.f32 %v2035_v30, %v1767_v54  ;;  %v2050_v32 = vmax.f32 %v1981_v18, 0.0  ;;  %v2052_v33 = vmax.f32 %v2034_v9, 0.0  ;;  %v2744_v53 = vld [vmem:[%s4017_s11] ss:$0 sm:$0xff] }
 0xa51   : > { %v2051_v35 = vmax.f32 %v1983_v16, 0.0  ;;  %v2053_v36 = vmax.f32 %v2036_v31, 0.0  ;;  %v2058_v41 = vpack.c.bf16 %v2050_v32, %v2046_v37  ;;  %v2060_v42 = vpack.c.bf16 %v2052_v33, %v2048_v38 }
 0xa53   : > { %v2059_v15 = vpack.c.bf16 %v2051_v35, %v2047_v17  ;;  %v2061_v19 = vpack.c.bf16 %v2053_v36, %v2049_v34 }
 0xa55   : > { %2365 = vmatprep.mubr.bf16.mxu1 %v2059_v15  ;;  %2414 = vmatprep.mubr.bf16.mxu0 %v2061_v19 }
 0xa56   : > { %2366 = vmatmul.mubr.bf16.gmra.mxu1 %v2058_v41  ;;  %2415 = vmatmul.mubr.bf16.gmra.mxu0 %v2060_v42 }
 0xb0e   : > { %v2838_v50 = vpop.f32.mrf.mxu1  ;;  %v2866_v52 = vpop.f32.mrf.mxu0 }
 0xb10   : > { %v2839_v54 = vpop.f32.mrf.mxu1  ;;  %v2867_v55 = vpop.f32.mrf.mxu0 }
 0xb11   : > { %v2840_v57 = vadd.f32 %v2839_v54, %v2838_v50  ;;  %v2868_v63 = vadd.f32 %v2867_v55, %v2866_v52  ;;  %v2778_v55 = vld [vmem:[%s4053_s18] ss:$0 sm:$0xff] }
 0xb12   : > { %v2841_v60 = vpop.f32.mrf.mxu1  ;;  %v2869_v61 = vpop.f32.mrf.mxu0 }
 0xb13   : > { %v2360_v62 = vadd.f32 %v2840_v57, %v2744_v53 }
 0xb14   : > { %v2842_v0 = vpop.f32.mrf.mxu1  ;;  %v2870_v3 = vpop.f32.mrf.mxu0 }
 0xb15   : > { %v2843_v4 = vadd.f32 %v2842_v0, %v2841_v60  ;;  %v2409_v5 = vadd.f32 %v2868_v63, %v2360_v62  ;;  %v2871_v10 = vadd.f32 %v2870_v3, %v2869_v61 }
 0xb16   : > { %v2844_v6 = vpop.f32.mrf.mxu1  ;;  %v2872_v11 = vpop.f32.mrf.mxu0 }
 0xb17   : > { %v2363_v8 = vadd.f32 %v2843_v4, %v2744_v53  ;;  %2425 = vadd.xlane.f32.xlu0 %v2409_v5 }
 0xb18   : > { %v2845_v59 = vpop.f32.mrf.mxu1  ;;  %v2873_v44 = vpop.f32.mrf.mxu0 }
 0xb19   : > { %v2846_v47 = vadd.f32 %v2845_v59, %v2844_v6  ;;  %v2412_v48 = vadd.f32 %v2871_v10, %v2363_v8  ;;  %v2874_v56 = vadd.f32 %v2873_v44, %v2872_v11 }
 0xb1a   : > { %v2847_v22 = vpop.f32.mrf.mxu1  ;;  %v2875_v51 = vpop.f32.mrf.mxu0 }
 0xb1b   : > { %v2368_v2 = vadd.f32 %v2846_v47, %v2744_v53  ;;  %2427 = vadd.xlane.f32.xlu1 %v2412_v48 }
 0xb1c   : > { %v2848_v58 = vpop.f32.mrf.mxu1  ;;  %v2876_v7 = vpop.f32.mrf.mxu0 }
 0xb1d   : > { %v2849_v23 = vadd.f32 %v2848_v58, %v2847_v22  ;;  %v2417_v1 = vadd.f32 %v2874_v56, %v2368_v2  ;;  %v2877_v21 = vadd.f32 %v2876_v7, %v2875_v51 }
 0xb1f   : > { %v2371_v12 = vadd.f32 %v2849_v23, %v2744_v53  ;;  %2429 = vadd.xlane.f32.xlu0 %v2417_v1  ;;  %v2777_v53 = vld [vmem:[%s4018_s12] ss:$0 sm:$0xff] }
 0xb21   : > { %v2420_v39 = vadd.f32 %v2877_v21, %v2371_v12 }
 0xb23   : > { %2431 = vadd.xlane.f32.xlu1 %v2420_v39 }
 0xba0   : > { %v2426_v24 = vpop.xlane.xlu0 %2425 }
 0xba1   : > { %v2433_v25 = vmul.f32 0.0078125, %v2426_v24 }
 0xba3   : > { %v2437_v26 = vsub.f32 %v2409_v5, %v2433_v25 }
 0xba4   : > { %v2428_v13 = vpop.xlane.xlu1 %2427 }
 0xba5   : > { %v2434_v46 = vmul.f32 0.0078125, %v2428_v13  ;;  %v2441_v20 = vmul.f32 %v2437_v26, %v2437_v26 }
 0xba7   : > { %v2438_v14 = vsub.f32 %v2412_v48, %v2434_v46  ;;  %2445 = vadd.xlane.f32.xlu0 %v2441_v20 }
 0xba8   : > { %v2430_v18 = vpop.xlane.xlu0 %2429 }
 0xba9   : > { %v2435_v9 = vmul.f32 0.0078125, %v2430_v18  ;;  %v2442_v27 = vmul.f32 %v2438_v14, %v2438_v14 }
 0xbab   : > { %v2439_v28 = vsub.f32 %v2417_v1, %v2435_v9  ;;  %2447 = vadd.xlane.f32.xlu1 %v2442_v27 }
 0xbac   : > { %v2432_v29 = vpop.xlane.xlu1 %2431 }
 0xbad   : > { %v2436_v30 = vmul.f32 0.0078125, %v2432_v29  ;;  %v2443_v16 = vmul.f32 %v2439_v28, %v2439_v28 }
 0xbaf   : > { %v2440_v31 = vsub.f32 %v2420_v39, %v2436_v30  ;;  %2449 = vadd.xlane.f32.xlu0 %v2443_v16 }
 0xbb1   : > { %v2444_v32 = vmul.f32 %v2440_v31, %v2440_v31 }
 0xbb3   : > { %2451 = vadd.xlane.f32.xlu1 %v2444_v32 }
 0xc30   : > { %v2446_v33 = vpop.xlane.xlu0 %2445 }
 0xc31   : > { %v2453_v17 = vmul.f32 0.0078125, %v2446_v33 }
 0xc33   : > { %v2457_v34 = vadd.f32 1e-05, %v2453_v17 }
 0xc34   : > { %v2448_v35 = vpop.xlane.xlu1 %2447 }
 0xc35   : > { %3264 = vrsqrt.f32 %v2457_v34  ;;  %v2454_v36 = vmul.f32 0.0078125, %v2448_v35 }
 0xc37   : > { %v2458_v37 = vadd.f32 1e-05, %v2454_v36 }
 0xc38   : > { %v2450_v38 = vpop.xlane.xlu0 %2449 }
 0xc39   : > { %3266 = vrsqrt.f32 %v2458_v37  ;;  %v2455_v15 = vmul.f32 0.0078125, %v2450_v38 }
 0xc3b   : > { %v2459_v19 = vadd.f32 1e-05, %v2455_v15 }
 0xc3c   : > { %v2452_v41 = vpop.xlane.xlu1 %2451 }
 0xc3d   : > { %3268 = vrsqrt.f32 %v2459_v19  ;;  %v2456_v42 = vmul.f32 0.0078125, %v2452_v41 }
 0xc3f   : > { %v2460_v50 = vadd.f32 1e-05, %v2456_v42 }
 0xc41   : > { %3270 = vrsqrt.f32 %v2460_v50 }
 0xc42   : > { %v3265_v52 = vpop.eup %3264 }
 0xc43   : > { %v2465_v54 = vmul.f32 %v3265_v52, %v2437_v26 }
 0xc45   : > { %v2475_v57 = vmul.f32 %v2777_v53, %v2465_v54 }
 0xc46   : > { %v3267_v60 = vpop.eup %3266 }
 0xc47   : > { %v2485_v61 = vadd.f32 %v2778_v55, %v2475_v57  ;;  %v2466_v62 = vmul.f32 %v3267_v60, %v2438_v14 }
 0xc49   : > { %v2489_v63 = vadd.f32 %v2485_v61, %v3889_v40  ;;  %v2476_v0 = vmul.f32 %v2777_v53, %v2466_v62 }
 0xc4a   : > { %v3269_v3 = vpop.eup %3268 }
 0xc4b   : > { %v2486_v4 = vadd.f32 %v2778_v55, %v2476_v0  ;;  %v2467_v5 = vmul.f32 %v3269_v3, %v2439_v28  ;;  %2493 = vst [vmem:[%s543_s23] sm:$0xff] %v2489_v63 }
 0xc4d   : > { %v2490_v6 = vadd.f32 %v2486_v4, %v3896_v45  ;;  %v2477_v11 = vmul.f32 %v2777_v53, %v2467_v5 }
 0xc4e   : > { %v3271_v8 = vpop.eup %3270 }
 0xc4f   : > { %v2487_v10 = vadd.f32 %v2778_v55, %v2477_v11  ;;  %v2468_v59 = vmul.f32 %v3271_v8, %v2440_v31  ;;  %2494 = vst [vmem:[%s543_s23 + $0x8] sm:$0xff] %v2490_v6 }
 0xc51   : > { %v2491_v44 = vadd.f32 %v2487_v10, %v3894_v43  ;;  %v2478_v47 = vmul.f32 %v2777_v53, %v2468_v59 }
 0xc53   : > { %v2488_v40 = vadd.f32 %v2778_v55, %v2478_v47  ;;  %2495 = vst [vmem:[%s543_s23 + $0x10] sm:$0xff] %v2491_v44 }
 0xc55   : > { %v2492_v45 = vadd.f32 %v2488_v40, %v3900_v49 }
 0xc57   : > { %2496 = vst [vmem:[%s543_s23 + $0x18] sm:$0xff] %v2492_v45 }
 0xc58   : > { %3421 = shalt.err (!%p3418_p2)
}
 0xc59   : > { %s3422_s27 = scalar_lea.hbm %s3960_s25, 512  ;;  %s3426_s23 = scalar_lea.hbm %s4054_s10, 1024 }
 0xc5a   : > { %p3423_p3 = scmp.ne.s32.totalorder %s3960_s25, %s3422_s27  ;;  %p3427_p0 = scmp.lt.s32.totalorder %s3960_s25, %s4054_s10 }
 0xc5b   : > { %p3428_p11 = scmp.lt.s32.totalorder %s3426_s23, %s3422_s27 }
 0xc5c   : > { %p3424_p4 = pnand %p3423_p3, %p4055_p7 }
 0xc5d   : > { %p3429_p6 = por %p3428_p11, %p3427_p0 }
 0xc5e   : > { %p3425_p8 = pneg %p3424_p4 }
 0xc60   : > { %p3430_p12 = pnand %p3429_p6, %p3425_p8 }
 0xc62   : > { %3433 = shalt.err (!%p3430_p12)
}
 0xc63   : > { %s3497_s22 = smov 128   ;;  %s3498_s3 = smov 8  }
 0xc64   : > { %2968 = dma.vmem_to_hbm [thread:$0]  (%p4055_p7), %s3962_s20, 512, %s3960_s25, %s2498_s26, %s3497_s22, %s3497_s22, %s3498_s3  }
 0xc65 PF: > { %s4056_s17 = sld [smem:[#allocation16_spill]]  ;;  %p4059_p13 = scmp.ge.s32.totalorder %s3480_s16, 2 }
 0xc66   : > { %s4057_s19 = sld [smem:[#allocation17_spill]] }
 0xc6b   : > { %s2526_s21 = sand.u32 1, %s4056_s17  }
 0xc6c   : > { %p4058_p9 = scmp.ne.s32.totalorder %s4057_s19, 0  ;;  %s2527_s27 = scalar_lea.sflag [#allocation4], %s2526_s21 }
 0xc6e   : > { %p2988_p5 = pnand %p4059_p13, %p4058_p9 }
 0xc70   : > { %p2989_p10 = pneg %p2988_p5 }
 0xc72   : > { %3463 = dma.done.wait (%p2989_p10), %s2527_s27, 512  }
 0xc73   : > { %3465 = vsyncadd (%p2989_p10), %s2527_s27, 4294966784  ;;  %p29_p1 = scmp.ge.s32.totalorder %s3662_s28, 4   ;;  %s4060_s29 = smov %s3472_s30 }
 0xc74   : > { %s4061_s30 = smov %s3476_s15  ;;  %s4062_s15 = smov %s3678_s14 }
 0xc75   : > { %s4063_s16 = smov %s3662_s28  ;;  %31 = sbr.rel (!%p29_p1) target bundleno = 14 (0xe), region = 137 }
 0xc7a   :  { %2532 = vsyncpa [#allocation3], 1 }
 0xc7b   :  { %2534 = vsyncpa [#allocation3 + $0x1], 1 }
 0xc7c   :  { %2535 = vsyncpa [#allocation6], 1 }
 0xc7d   :  { %2536 = vsyncpa [#allocation9], 1 }
 0xc7e   :  { %2537 = vsyncpa [#allocation4], 1 }
 0xc7f   :  { %2539 = vsyncpa [#allocation4 + $0x1], 1 }

</bundles_post_ra>
